<compile_context>
chip_gen: v7x
topology: tpu7x:2x2x1
jax: 0.10.0
libtpu: 0.0.40
codegen_flags: <defaults>
</compile_context>

<pallas_src>
import math

import jax
import jax.numpy as jnp
from jax import lax
from jax.experimental import pallas as pl
from jax.experimental.pallas import tpu as pltpu

# ----------------- small, module-consistent shapes -----------------
B = 2            # image batch
N_CLS = 8        # number of classes (original: 256)
T = 77           # CLIP token length (prefix 1 + ctx 4 + suffix 72 = 77)
N_CTX = 4        # learnable context tokens
D_TXT = 64       # text embedding dim   (original: 512)
D_JOINT = 128    # joint/visual prompt dim (original: >=512)
VOCAB = 64       # synthetic vocab for token_embed
N_JP = 75        # len(JP_list)
N_BL = 44        # len(BL_list)
IMG = 16         # image spatial size
CIN = 3
C1 = 32          # conv channels of RS stand-in
RS_OUT = 128     # RS head output dim (>=120 so slices [0:75] and [76:120] are valid)
HEADS = 4
DH = D_JOINT // HEADS
S_JOINT = 2 * 2                    # 2 text + 2 img compound prompt tokens
HW_RS = (IMG // 2) ** 2            # 8*8 spatial positions after conv stride 2

GRID_FUSED = 2                     # one parallel axis -> both v7x TCs busy
N_MSA = 3
N_MSA_PAD = 4                      # padded so layers split evenly over the grid
LAYERS_PER_STEP = N_MSA_PAD // GRID_FUSED
PROJ_ROW_TILE = 160                # 308 rows padded to 320 = 2 * 160


# ----------------- the single fused Pallas kernel -----------------
def _fused_kernel(patches_ref, cw_ref, cb_ref, fw_ref, fb_ref,
                  px_ref, pw_ref, pb_ref,
                  x_ref, wqkv_ref, wo_ref, b_ref,
                  att_o_ref, proj_o_ref, joint_o_ref):
    """One grid step does:
         * the full RS head (conv-as-matmul + ReLU + GAP + FC + sigmoid),
         * one 160-row tile of the merged proj_JB projection,
         * LAYERS_PER_STEP (=2) MSA layers (unrolled).
    Everything stays in VMEM / vregs; no intermediate touches HBM.
    """
    # ---- RS head ----
    feat = jnp.dot(patches_ref[...], cw_ref[...],
                   preferred_element_type=jnp.float32) + cb_ref[...]
    feat = jnp.maximum(feat, 0.0)                                     # (B*HW, C1) f32
    pooled = jnp.concatenate(
        [jnp.mean(feat[b * HW_RS:(b + 1) * HW_RS, :], axis=0, keepdims=True)
         for b in range(B)], axis=0)                                  # (B, C1) GAP (sublane reduce)
    logits = jnp.dot(pooled, fw_ref[...].astype(jnp.float32),
                     preferred_element_type=jnp.float32) + fb_ref[...]
    att_o_ref[0] = jax.nn.sigmoid(logits).astype(att_o_ref.dtype)     # (B, RS_OUT)

    # ---- proj_JB row tile: y = x @ W + b ----
    y = jnp.dot(px_ref[...], pw_ref[...],
                preferred_element_type=jnp.float32) + pb_ref[...]
    proj_o_ref[...] = y.astype(proj_o_ref.dtype)

    # ---- MSA layers of this grid step (unrolled) ----
    scale = 1.0 / math.sqrt(DH)
    for l in range(LAYERS_PER_STEP):
        x = x_ref[l]                                                  # (S, D) bf16
        qkv = jnp.dot(x, wqkv_ref[l],
                      preferred_element_type=jnp.float32)             # (S, 3D), one MXU push
        b_l = b_ref[l]                                                # (4, D): rows = bq, bk, bv, bo
        q = qkv[:, 0:D_JOINT] + b_l[0:1, :]
        k = qkv[:, D_JOINT:2 * D_JOINT] + b_l[1:2, :]
        v = qkv[:, 2 * D_JOINT:3 * D_JOINT] + b_l[2:3, :]
        wo_l = wo_ref[l].astype(jnp.float32)                          # (D, D)
        out = jnp.zeros((S_JOINT, D_JOINT), jnp.float32)
        for h in range(HEADS):
            lo, hi = h * DH, (h + 1) * DH
            qh, kh, vh = q[:, lo:hi], k[:, lo:hi], v[:, lo:hi]
            s = lax.dot_general(qh, kh, (((1,), (1,)), ((), ())),
                                preferred_element_type=jnp.float32) * scale   # (S, S)
            s = s - jnp.max(s, axis=-1, keepdims=True)
            p = jnp.exp(s)
            p = p * pl.reciprocal(jnp.sum(p, axis=-1, keepdims=True), approx=True)
            ctx_h = jnp.dot(p, vh, preferred_element_type=jnp.float32)        # (S, DH)
            # accumulate output projection per head -> no lane concat
            out = out + jnp.dot(ctx_h, wo_l[lo:hi, :],
                                preferred_element_type=jnp.float32)
        joint_o_ref[l] = (out + b_l[3:4, :]).astype(joint_o_ref.dtype)


def pallas_mm_fused(patches, conv_w, conv_b, fc_w, fc_b,
                    proj_x, proj_w, proj_b,
                    x_stack, wqkv_stack, wo_stack, b_stack):
    Mrs, Krs = patches.shape
    C = conv_w.shape[1]
    Nrs = fc_w.shape[1]
    Mp, Kp = proj_x.shape
    Np = proj_w.shape[1]
    L, S, D = x_stack.shape
    assert L % GRID_FUSED == 0 and Mp % GRID_FUSED == 0
    Lb = L // GRID_FUSED
    Rp = Mp // GRID_FUSED

    return pl.pallas_call(
        _fused_kernel,
        out_shape=(
            jax.ShapeDtypeStruct((GRID_FUSED, B, Nrs), jnp.float32),   # att (step-0 copy used)
            jax.ShapeDtypeStruct((Mp, Np), jnp.float32),               # proj_JB output
            jax.ShapeDtypeStruct((L, S, D), jnp.float32),              # MSA outputs (4 layers)
        ),
        grid=(GRID_FUSED,),
        in_specs=[
            pl.BlockSpec((Mrs, Krs), lambda i: (0, 0)),      # patches
            pl.BlockSpec((Krs, C), lambda i: (0, 0)),        # conv_w
            pl.BlockSpec((1, C), lambda i: (0, 0)),          # conv_b
            pl.BlockSpec((C, Nrs), lambda i: (0, 0)),        # fc_w
            pl.BlockSpec((1, Nrs), lambda i: (0, 0)),        # fc_b
            pl.BlockSpec((Rp, Kp), lambda i: (i, 0)),        # proj rows (tiled)
            pl.BlockSpec((Kp, Np), lambda i: (0, 0)),        # proj_w
            pl.BlockSpec((1, Np), lambda i: (0, 0)),         # proj_b
            pl.BlockSpec((Lb, S, D), lambda i: (i, 0, 0)),   # MSA inputs (2 layers / step)
            pl.BlockSpec((Lb, D, 3 * D), lambda i: (i, 0, 0)),
            pl.BlockSpec((Lb, D, D), lambda i: (i, 0, 0)),
            pl.BlockSpec((Lb, S, D), lambda i: (i, 0, 0)),
        ],
        out_specs=(
            pl.BlockSpec((1, B, Nrs), lambda i: (i, 0, 0)),
            pl.BlockSpec((Rp, Np), lambda i: (i, 0)),
            pl.BlockSpec((Lb, S, D), lambda i: (i, 0, 0)),
        ),
        compiler_params=pltpu.CompilerParams(dimension_semantics=("parallel",)),
    )(patches, conv_w, conv_b, fc_w, fc_b, proj_x, proj_w, proj_b,
      x_stack, wqkv_stack, wo_stack, b_stack)


# ----------------- glue -----------------
def im2col(x, k=3, stride=2, pad=1):
    """x: (B, H, W, C) NHWC -> (B, Ho, Wo, k*k*C) patches."""
    Bq, H, W, C = x.shape
    xp = jnp.pad(x, ((0, 0), (pad, pad), (pad, pad), (0, 0)))
    Ho = (H + 2 * pad - k) // stride + 1
    Wo = (W + 2 * pad - k) // stride + 1
    cols = []
    for di in range(k):
        for dj in range(k):
            cols.append(xp[:, di:di + stride * (Ho - 1) + 1:stride,
                           dj:dj + stride * (Wo - 1) + 1:stride, :])
    return jnp.concatenate(cols, axis=-1)


def init_params(key):
    ks = jax.random.split(key, 32)

    def nrm(k, shape, scale=0.02):
        return (scale * jax.random.normal(k, shape)).astype(jnp.float32)

    p = {
        "token_embed": nrm(ks[0], (VOCAB, D_TXT)),
        "ctx_text": nrm(ks[1], (N_CTX, D_TXT)),
        "ctx_img": nrm(ks[2], (N_CTX, D_JOINT)),
        "JP_prompts": nrm(ks[3], (N_JP, D_TXT)),
        "BL_prompts": nrm(ks[4], (N_BL, D_TXT)),
        "proj_JB_w": nrm(ks[5], (D_TXT, D_JOINT)),
        "proj_JB_b": jnp.zeros((1, D_JOINT), jnp.float32),
        "compound_prompts_text": [nrm(ks[6 + i], (2, D_JOINT)) for i in range(3)],
        "compound_prompts_img": [nrm(ks[9 + i], (2, D_JOINT)) for i in range(3)],
    }
    msas = []
    for i in range(3):
        base = 12 + 5 * i
        msas.append(dict(
            wq=nrm(ks[base + 0], (D_JOINT, D_JOINT)),
            wk=nrm(ks[base + 1], (D_JOINT, D_JOINT)),
            wv=nrm(ks[base + 2], (D_JOINT, D_JOINT)),
            wo=nrm(ks[base + 3], (D_JOINT, D_JOINT)),
            b=jnp.zeros((4, D_JOINT), jnp.float32),
        ))
    p["msa"] = msas
    # TODO(synk): pretrained ResNet backbone (self.RS) replaced by a small
    # conv3x3/s2 -> GAP -> FC stand-in with the same interface (sigmoid logits >= 120 dims).
    p["rs_conv_w"] = nrm(ks[27], (3 * 3 * CIN, C1))   # flattened (kH,kW,Cin)->Cout
    p["rs_conv_b"] = jnp.zeros((1, C1), jnp.float32)
    p["rs_fc_w"] = nrm(ks[28], (C1, RS_OUT))
    p["rs_fc_b"] = jnp.zeros((1, RS_OUT), jnp.float32)
    return p


def mm_prompter_forward(params, batch):
    bf16 = jnp.bfloat16
    emb_table = params["token_embed"]

    def embed(tok):                              # (..., T) int -> (..., T, D_TXT)
        return jnp.take(emb_table, tok, axis=0)

    # ---- prompt-augmented class texts ----
    ctx_text = params["ctx_text"]
    if ctx_text.ndim == 2:
        ctx_text = jnp.broadcast_to(ctx_text[None], (N_CLS, N_CTX, D_TXT))
    texts = embed(batch["tokens"])               # (N_CLS, 77, D_TXT)
    prefix = texts[:, :1, :]
    suffix = texts[:, 5:T, :]
    texts = jnp.concatenate([prefix, ctx_text, suffix], axis=1)

    texts_JP = embed(batch["tokens_JP"])
    texts_BL = embed(batch["tokens_BL"])

    att_T = jnp.concatenate([batch["labels_JP"], batch["labels_BL"]], axis=1)

    # ---- RS(img) operands: im2col so the conv runs as one MXU matmul ----
    img = jnp.transpose(batch["imgs"], (0, 2, 3, 1))        # NCHW -> NHWC
    patches = im2col(img, k=3, stride=2, pad=1)             # (B, 8, 8, 27)
    Bq, Ho, Wo, KC = patches.shape
    HW = Ho * Wo
    patches_flat = patches.reshape(Bq * HW, KC)
    KCP = 32                                                # pad K 27 -> 32 (zeros are inert)
    patches_flat = jnp.pad(patches_flat, ((0, 0), (0, KCP - KC))).astype(bf16)
    conv_w = jnp.pad(params["rs_conv_w"], ((0, KCP - KC), (0, 0))).astype(bf16)
    fc_w = params["rs_fc_w"].astype(bf16)

    # TODO(synk): clip.tokenize over predicted-label word lists is host-side string
    # processing with no Pallas equivalent; deterministic dummy tokens stand in here.
    embed_JP = embed(batch["dummy_token_JP"])               # (B, 77, D_TXT)
    embed_BL = embed(batch["dummy_token_BL"])

    # ---- proj_JB operands: merged JP+BL rows, padded 308 -> 320 = 2 tiles ----
    proj_in = jnp.concatenate([embed_JP.reshape(-1, D_TXT),
                               embed_BL.reshape(-1, D_TXT)], axis=0)     # (308, 64)
    M = proj_in.shape[0]
    M_pad = PROJ_ROW_TILE * pl.cdiv(M, PROJ_ROW_TILE)                    # 308 -> 320
    assert M_pad == GRID_FUSED * PROJ_ROW_TILE
    proj_in = jnp.pad(proj_in, ((0, M_pad - M), (0, 0))).astype(bf16)
    proj_w = params["proj_JB_w"].astype(bf16)

    # ---- MSA operands: 3 real layers + 1 dummy so the layer axis splits over the grid ----
    joint_list = [jnp.concatenate([params["compound_prompts_text"][i],
                                   params["compound_prompts_img"][i]], axis=0)
                  for i in range(N_MSA)]                                 # each (4, D_JOINT)
    joint_list.append(jnp.zeros((S_JOINT, D_JOINT), jnp.float32))
    x_stack = jnp.stack(joint_list, axis=0).astype(bf16)                 # (4, 4, D)

    wqkv_list = [jnp.concatenate([m["wq"], m["wk"], m["wv"]], axis=1)
                 for m in params["msa"]]
    wqkv_list.append(jnp.zeros((D_JOINT, 3 * D_JOINT), jnp.float32))
    wqkv_stack = jnp.stack(wqkv_list, axis=0).astype(bf16)               # (4, D, 3D)

    wo_list = [m["wo"] for m in params["msa"]] + [jnp.zeros((D_JOINT, D_JOINT), jnp.float32)]
    wo_stack = jnp.stack(wo_list, axis=0).astype(bf16)                   # (4, D, D)

    b_list = [m["b"] for m in params["msa"]] + [jnp.zeros((4, D_JOINT), jnp.float32)]
    b_stack = jnp.stack(b_list, axis=0)                                  # (4, 4, D) f32

    # ---- ONE fused pallas_call for RS head + proj_JB + all MSA layers ----
    att_full, proj_out, joint_out = pallas_mm_fused(
        patches_flat, conv_w, params["rs_conv_b"], fc_w, params["rs_fc_b"],
        proj_in, proj_w, params["proj_JB_b"],
        x_stack, wqkv_stack, wo_stack, b_stack)

    att_I = att_full[0]                                      # (B, 128); step-1 duplicate discarded
    lb_JP = att_I[:, 0:75]                                   # kept for parity with reference
    lb_BL = att_I[:, 76:120]
    del lb_JP, lb_BL

    imgs_JP = proj_out[0:B * T].reshape(B, T, D_JOINT)
    imgs_BL = proj_out[B * T:2 * B * T].reshape(B, T, D_JOINT)

    textual_prompts = [joint_out[i, 0:2, 0:D_TXT] for i in range(N_MSA)]  # mirrors [0:2, 0:512]
    visual_prompts = [joint_out[i, 2:4, :] for i in range(N_MSA)]

    return (texts, texts_JP, texts_BL, imgs_JP, imgs_BL,
            att_T.astype(jnp.float32), att_I.astype(jnp.float32),
            params["ctx_img"], params["JP_prompts"], params["BL_prompts"],
            textual_prompts, visual_prompts)


if __name__ == "__main__":
    key = jax.random.PRNGKey(0)
    k_par, k_tok, k_jp, k_bl, k_ljp, k_lbl, k_img, k_djp, k_dbl = jax.random.split(key, 9)

    params = init_params(k_par)
    batch = {
        "tokens": jax.random.randint(k_tok, (N_CLS, T), 0, VOCAB, dtype=jnp.int32),
        "tokens_JP": jax.random.randint(k_jp, (N_JP, T), 0, VOCAB, dtype=jnp.int32),
        "tokens_BL": jax.random.randint(k_bl, (N_BL, T), 0, VOCAB, dtype=jnp.int32),
        "labels_JP": (jax.random.uniform(k_ljp, (B, N_JP)) > 0.5).astype(jnp.float32),
        "labels_BL": (jax.random.uniform(k_lbl, (B, N_BL)) > 0.5).astype(jnp.float32),
        "imgs": jax.random.normal(k_img, (B, CIN, IMG, IMG), dtype=jnp.float32),
        "dummy_token_JP": jax.random.randint(k_djp, (B, T), 0, VOCAB, dtype=jnp.int32),
        "dummy_token_BL": jax.random.randint(k_dbl, (B, T), 0, VOCAB, dtype=jnp.int32),
    }

    out = mm_prompter_forward(params, batch)
    out = jax.block_until_ready(out)

    # light sanity checks on shapes / values
    assert out[0].shape == (N_CLS, T, D_TXT)
    assert out[3].shape == (B, T, D_JOINT)
    assert out[4].shape == (B, T, D_JOINT)
    assert out[6].shape == (B, RS_OUT)
    assert out[10][0].shape == (2, D_TXT) and out[11][0].shape == (2, D_JOINT)
    assert bool(jnp.isfinite(out[6]).all())
    assert bool(jnp.isfinite(out[3]).all())
    assert all(bool(jnp.isfinite(t).all()) for t in out[10])
    print("KERNEL_OK")
</pallas_src>

<mosaic_0001>
module attributes {stable_mosaic.version = 11 : i64} {
  func.func @_fused_kernel(%arg0: i32, %arg1: memref<128x32xbf16, #tpu.memory_space<vmem>>, %arg2: memref<32x32xbf16, #tpu.memory_space<vmem>>, %arg3: memref<1x32xf32, #tpu.memory_space<vmem>>, %arg4: memref<32x128xbf16, #tpu.memory_space<vmem>>, %arg5: memref<1x128xf32, #tpu.memory_space<vmem>>, %arg6: memref<160x64xbf16, #tpu.memory_space<vmem>>, %arg7: memref<64x128xbf16, #tpu.memory_space<vmem>>, %arg8: memref<1x128xf32, #tpu.memory_space<vmem>>, %arg9: memref<2x4x128xbf16, #tpu.memory_space<vmem>>, %arg10: memref<2x128x384xbf16, #tpu.memory_space<vmem>>, %arg11: memref<2x128x128xbf16, #tpu.memory_space<vmem>>, %arg12: memref<2x4x128xf32, #tpu.memory_space<vmem>>, %arg13: memref<1x2x128xf32, #tpu.memory_space<vmem>>, %arg14: memref<160x128xf32, #tpu.memory_space<vmem>>, %arg15: memref<2x4x128xf32, #tpu.memory_space<vmem>>) attributes {dimension_semantics = [#tpu.dimension_semantics<parallel>], iteration_bounds = array<i64: 2>, scalar_prefetch = 0 : i64, scratch_operands = 0 : i64, tpu.core_type = #tpu.core_type<tc>, window_params = [{pipeline_mode = #tpu.pipeline_mode<synchronous>, transform_indices = @transform_0, window_bounds = array<i64: 128, 32>}, {pipeline_mode = #tpu.pipeline_mode<synchronous>, transform_indices = @transform_1, window_bounds = array<i64: 32, 32>}, {pipeline_mode = #tpu.pipeline_mode<synchronous>, transform_indices = @transform_2, window_bounds = array<i64: 1, 32>}, {pipeline_mode = #tpu.pipeline_mode<synchronous>, transform_indices = @transform_3, window_bounds = array<i64: 32, 128>}, {pipeline_mode = #tpu.pipeline_mode<synchronous>, transform_indices = @transform_4, window_bounds = array<i64: 1, 128>}, {transform_indices = @transform_5, window_bounds = array<i64: 160, 64>}, {pipeline_mode = #tpu.pipeline_mode<synchronous>, transform_indices = @transform_6, window_bounds = array<i64: 64, 128>}, {pipeline_mode = #tpu.pipeline_mode<synchronous>, transform_indices = @transform_7, window_bounds = array<i64: 1, 128>}, {transform_indices = @transform_8, window_bounds = array<i64: 2, 4, 128>}, {transform_indices = @transform_9, window_bounds = array<i64: 2, 128, 384>}, {transform_indices = @transform_10, window_bounds = array<i64: 2, 128, 128>}, {transform_indices = @transform_11, window_bounds = array<i64: 2, 4, 128>}, {transform_indices = @transform_12, window_bounds = array<i64: 1, 2, 128>}, {transform_indices = @transform_13, window_bounds = array<i64: 160, 128>}, {transform_indices = @transform_14, window_bounds = array<i64: 2, 4, 128>}]} {
    %c0 = arith.constant 0 : index
    %c0_0 = arith.constant 0 : index
    %0 = vector.load %arg1[%c0, %c0_0] : memref<128x32xbf16, #tpu.memory_space<vmem>>, vector<128x32xbf16>
    %c0_1 = arith.constant 0 : index
    %c0_2 = arith.constant 0 : index
    %1 = vector.load %arg2[%c0_1, %c0_2] : memref<32x32xbf16, #tpu.memory_space<vmem>>, vector<32x32xbf16>
    %cst = arith.constant dense<0.000000e+00> : vector<128x32xf32>
    %2 = tpu.matmul %0, %1, %cst {dimension_numbers = #tpu.dot_dimension_numbers<[1], [0], [0], [1], [0, 0, 1, 1], [], []>} : vector<128x32xbf16>, vector<32x32xbf16>, vector<128x32xf32> -> vector<128x32xf32>
    %c0_3 = arith.constant 0 : index
    %c0_4 = arith.constant 0 : index
    %3 = vector.load %arg3[%c0_3, %c0_4] : memref<1x32xf32, #tpu.memory_space<vmem>>, vector<1x32xf32>
    %4 = vector.broadcast %3 : vector<1x32xf32> to vector<128x32xf32>
    %5 = arith.addf %2, %4 : vector<128x32xf32>
    %cst_5 = arith.constant 0.000000e+00 : f32
    %6 = vector.broadcast %cst_5 : f32 to vector<128x32xf32>
    %7 = arith.maximumf %5, %6 : vector<128x32xf32>
    %8 = vector.extract_strided_slice %7 {offsets = [0, 0], sizes = [64, 32], strides = [1, 1]} : vector<128x32xf32> to vector<64x32xf32>
    %cst_6 = arith.constant dense<0.000000e+00> : vector<32xf32>
    %9 = vector.multi_reduction <add>, %8, %cst_6 [0] : vector<64x32xf32> to vector<32xf32>
    %10 = vector.shape_cast %9 : vector<32xf32> to vector<1x32xf32>
    %cst_7 = arith.constant 6.400000e+01 : f32
    %11 = vector.broadcast %cst_7 : f32 to vector<1x32xf32>
    %12 = arith.divf %10, %11 : vector<1x32xf32>
    %13 = vector.extract_strided_slice %7 {offsets = [64, 0], sizes = [64, 32], strides = [1, 1]} : vector<128x32xf32> to vector<64x32xf32>
    %cst_8 = arith.constant dense<0.000000e+00> : vector<32xf32>
    %14 = vector.multi_reduction <add>, %13, %cst_8 [0] : vector<64x32xf32> to vector<32xf32>
    %15 = vector.shape_cast %14 : vector<32xf32> to vector<1x32xf32>
    %cst_9 = arith.constant 6.400000e+01 : f32
    %16 = vector.broadcast %cst_9 : f32 to vector<1x32xf32>
    %17 = arith.divf %15, %16 : vector<1x32xf32>
    %18 = tpu.concatenate %12, %17 in 0 : vector<1x32xf32>, vector<1x32xf32> -> vector<2x32xf32>
    %c0_10 = arith.constant 0 : index
    %c0_11 = arith.constant 0 : index
    %19 = vector.load %arg4[%c0_10, %c0_11] : memref<32x128xbf16, #tpu.memory_space<vmem>>, vector<32x128xbf16>
    %20 = arith.extf %19 : vector<32x128xbf16> to vector<32x128xf32>
    %cst_12 = arith.constant dense<0.000000e+00> : vector<2x128xf32>
    %21 = tpu.matmul %18, %20, %cst_12 {dimension_numbers = #tpu.dot_dimension_numbers<[1], [0], [0], [1], [0, 0, 1, 1], [], []>} : vector<2x32xf32>, vector<32x128xf32>, vector<2x128xf32> -> vector<2x128xf32>
    %c0_13 = arith.constant 0 : index
    %c0_14 = arith.constant 0 : index
    %22 = vector.load %arg5[%c0_13, %c0_14] : memref<1x128xf32, #tpu.memory_space<vmem>>, vector<1x128xf32>
    %23 = vector.broadcast %22 : vector<1x128xf32> to vector<2x128xf32>
    %24 = arith.addf %21, %23 : vector<2x128xf32>
    %25 = arith.negf %24 : vector<2x128xf32>
    %26 = math.exp %25 : vector<2x128xf32>
    %cst_15 = arith.constant 1.000000e+00 : f32
    %27 = vector.broadcast %cst_15 : f32 to vector<2x128xf32>
    %28 = arith.addf %27, %26 : vector<2x128xf32>
    %29 = arith.divf %27, %28 : vector<2x128xf32>
    %c0_16 = arith.constant 0 : index
    %c0_17 = arith.constant 0 : index
    %c0_18 = arith.constant 0 : index
    %30 = vector.load %arg13[%c0_16, %c0_17, %c0_18] : memref<1x2x128xf32, #tpu.memory_space<vmem>>, vector<1x2x128xf32>
    %31 = vector.shape_cast %30 : vector<1x2x128xf32> to vector<2x128xf32>
    %32 = vector.shape_cast %29 : vector<2x128xf32> to vector<1x2x128xf32>
    tpu.vector_store %arg13[%c0_16, %c0_17, %c0_18], %32 {strides = array<i32>} : memref<1x2x128xf32, #tpu.memory_space<vmem>>, vector<1x2x128xf32>,
    %c0_19 = arith.constant 0 : index
    %c0_20 = arith.constant 0 : index
    %33 = vector.load %arg6[%c0_19, %c0_20] : memref<160x64xbf16, #tpu.memory_space<vmem>>, vector<160x64xbf16>
    %c0_21 = arith.constant 0 : index
    %c0_22 = arith.constant 0 : index
    %34 = vector.load %arg7[%c0_21, %c0_22] : memref<64x128xbf16, #tpu.memory_space<vmem>>, vector<64x128xbf16>
    %cst_23 = arith.constant dense<0.000000e+00> : vector<160x128xf32>
    %35 = tpu.matmul %33, %34, %cst_23 {dimension_numbers = #tpu.dot_dimension_numbers<[1], [0], [0], [1], [0, 0, 1, 1], [], []>} : vector<160x64xbf16>, vector<64x128xbf16>, vector<160x128xf32> -> vector<160x128xf32>
    %c0_24 = arith.constant 0 : index
    %c0_25 = arith.constant 0 : index
    %36 = vector.load %arg8[%c0_24, %c0_25] : memref<1x128xf32, #tpu.memory_space<vmem>>, vector<1x128xf32>
    %37 = vector.broadcast %36 : vector<1x128xf32> to vector<160x128xf32>
    %38 = arith.addf %35, %37 : vector<160x128xf32>
    %c0_26 = arith.constant 0 : index
    %c0_27 = arith.constant 0 : index
    %39 = vector.load %arg14[%c0_26, %c0_27] : memref<160x128xf32, #tpu.memory_space<vmem>>, vector<160x128xf32>
    tpu.vector_store %arg14[%c0_26, %c0_27], %38 {strides = array<i32>} : memref<160x128xf32, #tpu.memory_space<vmem>>, vector<160x128xf32>,
    %c0_28 = arith.constant 0 : index
    %c0_29 = arith.constant 0 : index
    %c0_30 = arith.constant 0 : index
    %40 = vector.load %arg9[%c0_28, %c0_29, %c0_30] : memref<2x4x128xbf16, #tpu.memory_space<vmem>>, vector<1x4x128xbf16>
    %41 = vector.shape_cast %40 : vector<1x4x128xbf16> to vector<4x128xbf16>
    %c0_31 = arith.constant 0 : index
    %c0_32 = arith.constant 0 : index
    %c0_33 = arith.constant 0 : index
    %42 = vector.load %arg10[%c0_31, %c0_32, %c0_33] : memref<2x128x384xbf16, #tpu.memory_space<vmem>>, vector<1x128x384xbf16>
    %43 = vector.shape_cast %42 : vector<1x128x384xbf16> to vector<128x384xbf16>
    %cst_34 = arith.constant dense<0.000000e+00> : vector<4x384xf32>
    %44 = tpu.matmul %41, %43, %cst_34 {dimension_numbers = #tpu.dot_dimension_numbers<[1], [0], [0], [1], [0, 0, 1, 1], [], []>} : vector<4x128xbf16>, vector<128x384xbf16>, vector<4x384xf32> -> vector<4x384xf32>
    %c0_35 = arith.constant 0 : index
    %c0_36 = arith.constant 0 : index
    %c0_37 = arith.constant 0 : index
    %45 = vector.load %arg12[%c0_35, %c0_36, %c0_37] : memref<2x4x128xf32, #tpu.memory_space<vmem>>, vector<1x4x128xf32>
    %46 = vector.shape_cast %45 : vector<1x4x128xf32> to vector<4x128xf32>
    %47 = vector.extract_strided_slice %44 {offsets = [0, 0], sizes = [4, 128], strides = [1, 1]} : vector<4x384xf32> to vector<4x128xf32>
    %48 = vector.extract_strided_slice %46 {offsets = [0, 0], sizes = [1, 128], strides = [1, 1]} : vector<4x128xf32> to vector<1x128xf32>
    %49 = vector.broadcast %48 : vector<1x128xf32> to vector<4x128xf32>
    %50 = arith.addf %47, %49 : vector<4x128xf32>
    %51 = vector.extract_strided_slice %44 {offsets = [0, 128], sizes = [4, 128], strides = [1, 1]} : vector<4x384xf32> to vector<4x128xf32>
    %52 = vector.extract_strided_slice %46 {offsets = [1, 0], sizes = [1, 128], strides = [1, 1]} : vector<4x128xf32> to vector<1x128xf32>
    %53 = vector.broadcast %52 : vector<1x128xf32> to vector<4x128xf32>
    %54 = arith.addf %51, %53 : vector<4x128xf32>
    %55 = vector.extract_strided_slice %44 {offsets = [0, 256], sizes = [4, 128], strides = [1, 1]} : vector<4x384xf32> to vector<4x128xf32>
    %56 = vector.extract_strided_slice %46 {offsets = [2, 0], sizes = [1, 128], strides = [1, 1]} : vector<4x128xf32> to vector<1x128xf32>
    %57 = vector.broadcast %56 : vector<1x128xf32> to vector<4x128xf32>
    %58 = arith.addf %55, %57 : vector<4x128xf32>
    %c0_38 = arith.constant 0 : index
    %c0_39 = arith.constant 0 : index
    %c0_40 = arith.constant 0 : index
    %59 = vector.load %arg11[%c0_38, %c0_39, %c0_40] : memref<2x128x128xbf16, #tpu.memory_space<vmem>>, vector<1x128x128xbf16>
    %60 = vector.shape_cast %59 : vector<1x128x128xbf16> to vector<128x128xbf16>
    %61 = arith.extf %60 : vector<128x128xbf16> to vector<128x128xf32>
    %cst_41 = arith.constant 0.000000e+00 : f32
    %62 = vector.broadcast %cst_41 : f32 to vector<4x128xf32>
    %63 = vector.extract_strided_slice %50 {offsets = [0, 0], sizes = [4, 32], strides = [1, 1]} : vector<4x128xf32> to vector<4x32xf32>
    %64 = vector.extract_strided_slice %54 {offsets = [0, 0], sizes = [4, 32], strides = [1, 1]} : vector<4x128xf32> to vector<4x32xf32>
    %65 = vector.extract_strided_slice %58 {offsets = [0, 0], sizes = [4, 32], strides = [1, 1]} : vector<4x128xf32> to vector<4x32xf32>
    %cst_42 = arith.constant dense<0.000000e+00> : vector<4x4xf32>
    %66 = tpu.matmul %63, %64, %cst_42 {dimension_numbers = #tpu.dot_dimension_numbers<[1], [1], [0], [0], [0, 0, 1, 0], [], []>} : vector<4x32xf32>, vector<4x32xf32>, vector<4x4xf32> -> vector<4x4xf32>
    %cst_43 = arith.constant 0.176776692 : f32
    %67 = vector.broadcast %cst_43 : f32 to vector<4x4xf32>
    %68 = arith.mulf %66, %67 : vector<4x4xf32>
    %cst_44 = arith.constant dense<0xFF800000> : vector<4xf32>
    %69 = vector.multi_reduction <maximumf>, %68, %cst_44 [1] : vector<4x4xf32> to vector<4xf32>
    %70 = vector.shape_cast %69 : vector<4xf32> to vector<4x1xf32>
    %71 = vector.broadcast %70 : vector<4x1xf32> to vector<4x4xf32>
    %72 = arith.subf %68, %71 : vector<4x4xf32>
    %73 = math.exp %72 : vector<4x4xf32>
    %cst_45 = arith.constant dense<0.000000e+00> : vector<4xf32>
    %74 = vector.multi_reduction <add>, %73, %cst_45 [1] : vector<4x4xf32> to vector<4xf32>
    %75 = vector.shape_cast %74 : vector<4xf32> to vector<4x1xf32>
    %76 = tpu.reciprocal %75 {approx = true} : vector<4x1xf32> -> vector<4x1xf32>
    %77 = vector.broadcast %76 : vector<4x1xf32> to vector<4x4xf32>
    %78 = arith.mulf %73, %77 : vector<4x4xf32>
    %cst_46 = arith.constant dense<0.000000e+00> : vector<4x32xf32>
    %79 = tpu.matmul %78, %65, %cst_46 {dimension_numbers = #tpu.dot_dimension_numbers<[1], [0], [0], [1], [0, 0, 1, 1], [], []>} : vector<4x4xf32>, vector<4x32xf32>, vector<4x32xf32> -> vector<4x32xf32>
    %80 = vector.extract_strided_slice %61 {offsets = [0, 0], sizes = [32, 128], strides = [1, 1]} : vector<128x128xf32> to vector<32x128xf32>
    %cst_47 = arith.constant dense<0.000000e+00> : vector<4x128xf32>
    %81 = tpu.matmul %79, %80, %cst_47 {dimension_numbers = #tpu.dot_dimension_numbers<[1], [0], [0], [1], [0, 0, 1, 1], [], []>} : vector<4x32xf32>, vector<32x128xf32>, vector<4x128xf32> -> vector<4x128xf32>
    %82 = arith.addf %62, %81 : vector<4x128xf32>
    %83 = vector.extract_strided_slice %50 {offsets = [0, 32], sizes = [4, 32], strides = [1, 1]} : vector<4x128xf32> to vector<4x32xf32>
    %84 = vector.extract_strided_slice %54 {offsets = [0, 32], sizes = [4, 32], strides = [1, 1]} : vector<4x128xf32> to vector<4x32xf32>
    %85 = vector.extract_strided_slice %58 {offsets = [0, 32], sizes = [4, 32], strides = [1, 1]} : vector<4x128xf32> to vector<4x32xf32>
    %cst_48 = arith.constant dense<0.000000e+00> : vector<4x4xf32>
    %86 = tpu.matmul %83, %84, %cst_48 {dimension_numbers = #tpu.dot_dimension_numbers<[1], [1], [0], [0], [0, 0, 1, 0], [], []>} : vector<4x32xf32>, vector<4x32xf32>, vector<4x4xf32> -> vector<4x4xf32>
    %cst_49 = arith.constant 0.176776692 : f32
    %87 = vector.broadcast %cst_49 : f32 to vector<4x4xf32>
    %88 = arith.mulf %86, %87 : vector<4x4xf32>
    %cst_50 = arith.constant dense<0xFF800000> : vector<4xf32>
    %89 = vector.multi_reduction <maximumf>, %88, %cst_50 [1] : vector<4x4xf32> to vector<4xf32>
    %90 = vector.shape_cast %89 : vector<4xf32> to vector<4x1xf32>
    %91 = vector.broadcast %90 : vector<4x1xf32> to vector<4x4xf32>
    %92 = arith.subf %88, %91 : vector<4x4xf32>
    %93 = math.exp %92 : vector<4x4xf32>
    %cst_51 = arith.constant dense<0.000000e+00> : vector<4xf32>
    %94 = vector.multi_reduction <add>, %93, %cst_51 [1] : vector<4x4xf32> to vector<4xf32>
    %95 = vector.shape_cast %94 : vector<4xf32> to vector<4x1xf32>
    %96 = tpu.reciprocal %95 {approx = true} : vector<4x1xf32> -> vector<4x1xf32>
    %97 = vector.broadcast %96 : vector<4x1xf32> to vector<4x4xf32>
    %98 = arith.mulf %93, %97 : vector<4x4xf32>
    %cst_52 = arith.constant dense<0.000000e+00> : vector<4x32xf32>
    %99 = tpu.matmul %98, %85, %cst_52 {dimension_numbers = #tpu.dot_dimension_numbers<[1], [0], [0], [1], [0, 0, 1, 1], [], []>} : vector<4x4xf32>, vector<4x32xf32>, vector<4x32xf32> -> vector<4x32xf32>
    %100 = vector.extract_strided_slice %61 {offsets = [32, 0], sizes = [32, 128], strides = [1, 1]} : vector<128x128xf32> to vector<32x128xf32>
    %cst_53 = arith.constant dense<0.000000e+00> : vector<4x128xf32>
    %101 = tpu.matmul %99, %100, %cst_53 {dimension_numbers = #tpu.dot_dimension_numbers<[1], [0], [0], [1], [0, 0, 1, 1], [], []>} : vector<4x32xf32>, vector<32x128xf32>, vector<4x128xf32> -> vector<4x128xf32>
    %102 = arith.addf %82, %101 : vector<4x128xf32>
    %103 = vector.extract_strided_slice %50 {offsets = [0, 64], sizes = [4, 32], strides = [1, 1]} : vector<4x128xf32> to vector<4x32xf32>
    %104 = vector.extract_strided_slice %54 {offsets = [0, 64], sizes = [4, 32], strides = [1, 1]} : vector<4x128xf32> to vector<4x32xf32>
    %105 = vector.extract_strided_slice %58 {offsets = [0, 64], sizes = [4, 32], strides = [1, 1]} : vector<4x128xf32> to vector<4x32xf32>
    %cst_54 = arith.constant dense<0.000000e+00> : vector<4x4xf32>
    %106 = tpu.matmul %103, %104, %cst_54 {dimension_numbers = #tpu.dot_dimension_numbers<[1], [1], [0], [0], [0, 0, 1, 0], [], []>} : vector<4x32xf32>, vector<4x32xf32>, vector<4x4xf32> -> vector<4x4xf32>
    %cst_55 = arith.constant 0.176776692 : f32
    %107 = vector.broadcast %cst_55 : f32 to vector<4x4xf32>
    %108 = arith.mulf %106, %107 : vector<4x4xf32>
    %cst_56 = arith.constant dense<0xFF800000> : vector<4xf32>
    %109 = vector.multi_reduction <maximumf>, %108, %cst_56 [1] : vector<4x4xf32> to vector<4xf32>
    %110 = vector.shape_cast %109 : vector<4xf32> to vector<4x1xf32>
    %111 = vector.broadcast %110 : vector<4x1xf32> to vector<4x4xf32>
    %112 = arith.subf %108, %111 : vector<4x4xf32>
    %113 = math.exp %112 : vector<4x4xf32>
    %cst_57 = arith.constant dense<0.000000e+00> : vector<4xf32>
    %114 = vector.multi_reduction <add>, %113, %cst_57 [1] : vector<4x4xf32> to vector<4xf32>
    %115 = vector.shape_cast %114 : vector<4xf32> to vector<4x1xf32>
    %116 = tpu.reciprocal %115 {approx = true} : vector<4x1xf32> -> vector<4x1xf32>
    %117 = vector.broadcast %116 : vector<4x1xf32> to vector<4x4xf32>
    %118 = arith.mulf %113, %117 : vector<4x4xf32>
    %cst_58 = arith.constant dense<0.000000e+00> : vector<4x32xf32>
    %119 = tpu.matmul %118, %105, %cst_58 {dimension_numbers = #tpu.dot_dimension_numbers<[1], [0], [0], [1], [0, 0, 1, 1], [], []>} : vector<4x4xf32>, vector<4x32xf32>, vector<4x32xf32> -> vector<4x32xf32>
    %120 = vector.extract_strided_slice %61 {offsets = [64, 0], sizes = [32, 128], strides = [1, 1]} : vector<128x128xf32> to vector<32x128xf32>
    %cst_59 = arith.constant dense<0.000000e+00> : vector<4x128xf32>
    %121 = tpu.matmul %119, %120, %cst_59 {dimension_numbers = #tpu.dot_dimension_numbers<[1], [0], [0], [1], [0, 0, 1, 1], [], []>} : vector<4x32xf32>, vector<32x128xf32>, vector<4x128xf32> -> vector<4x128xf32>
    %122 = arith.addf %102, %121 : vector<4x128xf32>
    %123 = vector.extract_strided_slice %50 {offsets = [0, 96], sizes = [4, 32], strides = [1, 1]} : vector<4x128xf32> to vector<4x32xf32>
    %124 = vector.extract_strided_slice %54 {offsets = [0, 96], sizes = [4, 32], strides = [1, 1]} : vector<4x128xf32> to vector<4x32xf32>
    %125 = vector.extract_strided_slice %58 {offsets = [0, 96], sizes = [4, 32], strides = [1, 1]} : vector<4x128xf32> to vector<4x32xf32>
    %cst_60 = arith.constant dense<0.000000e+00> : vector<4x4xf32>
    %126 = tpu.matmul %123, %124, %cst_60 {dimension_numbers = #tpu.dot_dimension_numbers<[1], [1], [0], [0], [0, 0, 1, 0], [], []>} : vector<4x32xf32>, vector<4x32xf32>, vector<4x4xf32> -> vector<4x4xf32>
    %cst_61 = arith.constant 0.176776692 : f32
    %127 = vector.broadcast %cst_61 : f32 to vector<4x4xf32>
    %128 = arith.mulf %126, %127 : vector<4x4xf32>
    %cst_62 = arith.constant dense<0xFF800000> : vector<4xf32>
    %129 = vector.multi_reduction <maximumf>, %128, %cst_62 [1] : vector<4x4xf32> to vector<4xf32>
    %130 = vector.shape_cast %129 : vector<4xf32> to vector<4x1xf32>
    %131 = vector.broadcast %130 : vector<4x1xf32> to vector<4x4xf32>
    %132 = arith.subf %128, %131 : vector<4x4xf32>
    %133 = math.exp %132 : vector<4x4xf32>
    %cst_63 = arith.constant dense<0.000000e+00> : vector<4xf32>
    %134 = vector.multi_reduction <add>, %133, %cst_63 [1] : vector<4x4xf32> to vector<4xf32>
    %135 = vector.shape_cast %134 : vector<4xf32> to vector<4x1xf32>
    %136 = tpu.reciprocal %135 {approx = true} : vector<4x1xf32> -> vector<4x1xf32>
    %137 = vector.broadcast %136 : vector<4x1xf32> to vector<4x4xf32>
    %138 = arith.mulf %133, %137 : vector<4x4xf32>
    %cst_64 = arith.constant dense<0.000000e+00> : vector<4x32xf32>
    %139 = tpu.matmul %138, %125, %cst_64 {dimension_numbers = #tpu.dot_dimension_numbers<[1], [0], [0], [1], [0, 0, 1, 1], [], []>} : vector<4x4xf32>, vector<4x32xf32>, vector<4x32xf32> -> vector<4x32xf32>
    %140 = vector.extract_strided_slice %61 {offsets = [96, 0], sizes = [32, 128], strides = [1, 1]} : vector<128x128xf32> to vector<32x128xf32>
    %cst_65 = arith.constant dense<0.000000e+00> : vector<4x128xf32>
    %141 = tpu.matmul %139, %140, %cst_65 {dimension_numbers = #tpu.dot_dimension_numbers<[1], [0], [0], [1], [0, 0, 1, 1], [], []>} : vector<4x32xf32>, vector<32x128xf32>, vector<4x128xf32> -> vector<4x128xf32>
    %142 = arith.addf %122, %141 : vector<4x128xf32>
    %143 = vector.extract_strided_slice %46 {offsets = [3, 0], sizes = [1, 128], strides = [1, 1]} : vector<4x128xf32> to vector<1x128xf32>
    %144 = vector.broadcast %143 : vector<1x128xf32> to vector<4x128xf32>
    %145 = arith.addf %142, %144 : vector<4x128xf32>
    %c0_66 = arith.constant 0 : index
    %c0_67 = arith.constant 0 : index
    %c0_68 = arith.constant 0 : index
    %146 = vector.load %arg15[%c0_66, %c0_67, %c0_68] : memref<2x4x128xf32, #tpu.memory_space<vmem>>, vector<1x4x128xf32>
    %147 = vector.shape_cast %146 : vector<1x4x128xf32> to vector<4x128xf32>
    %148 = vector.shape_cast %145 : vector<4x128xf32> to vector<1x4x128xf32>
    tpu.vector_store %arg15[%c0_66, %c0_67, %c0_68], %148 {strides = array<i32>} : memref<2x4x128xf32, #tpu.memory_space<vmem>>, vector<1x4x128xf32>,
    %c1 = arith.constant 1 : index
    %c0_69 = arith.constant 0 : index
    %c0_70 = arith.constant 0 : index
    %149 = vector.load %arg9[%c1, %c0_69, %c0_70] : memref<2x4x128xbf16, #tpu.memory_space<vmem>>, vector<1x4x128xbf16>
    %150 = vector.shape_cast %149 : vector<1x4x128xbf16> to vector<4x128xbf16>
    %c1_71 = arith.constant 1 : index
    %c0_72 = arith.constant 0 : index
    %c0_73 = arith.constant 0 : index
    %151 = vector.load %arg10[%c1_71, %c0_72, %c0_73] : memref<2x128x384xbf16, #tpu.memory_space<vmem>>, vector<1x128x384xbf16>
    %152 = vector.shape_cast %151 : vector<1x128x384xbf16> to vector<128x384xbf16>
    %cst_74 = arith.constant dense<0.000000e+00> : vector<4x384xf32>
    %153 = tpu.matmul %150, %152, %cst_74 {dimension_numbers = #tpu.dot_dimension_numbers<[1], [0], [0], [1], [0, 0, 1, 1], [], []>} : vector<4x128xbf16>, vector<128x384xbf16>, vector<4x384xf32> -> vector<4x384xf32>
    %c1_75 = arith.constant 1 : index
    %c0_76 = arith.constant 0 : index
    %c0_77 = arith.constant 0 : index
    %154 = vector.load %arg12[%c1_75, %c0_76, %c0_77] : memref<2x4x128xf32, #tpu.memory_space<vmem>>, vector<1x4x128xf32>
    %155 = vector.shape_cast %154 : vector<1x4x128xf32> to vector<4x128xf32>
    %156 = vector.extract_strided_slice %153 {offsets = [0, 0], sizes = [4, 128], strides = [1, 1]} : vector<4x384xf32> to vector<4x128xf32>
    %157 = vector.extract_strided_slice %155 {offsets = [0, 0], sizes = [1, 128], strides = [1, 1]} : vector<4x128xf32> to vector<1x128xf32>
    %158 = vector.broadcast %157 : vector<1x128xf32> to vector<4x128xf32>
    %159 = arith.addf %156, %158 : vector<4x128xf32>
    %160 = vector.extract_strided_slice %153 {offsets = [0, 128], sizes = [4, 128], strides = [1, 1]} : vector<4x384xf32> to vector<4x128xf32>
    %161 = vector.extract_strided_slice %155 {offsets = [1, 0], sizes = [1, 128], strides = [1, 1]} : vector<4x128xf32> to vector<1x128xf32>
    %162 = vector.broadcast %161 : vector<1x128xf32> to vector<4x128xf32>
    %163 = arith.addf %160, %162 : vector<4x128xf32>
    %164 = vector.extract_strided_slice %153 {offsets = [0, 256], sizes = [4, 128], strides = [1, 1]} : vector<4x384xf32> to vector<4x128xf32>
    %165 = vector.extract_strided_slice %155 {offsets = [2, 0], sizes = [1, 128], strides = [1, 1]} : vector<4x128xf32> to vector<1x128xf32>
    %166 = vector.broadcast %165 : vector<1x128xf32> to vector<4x128xf32>
    %167 = arith.addf %164, %166 : vector<4x128xf32>
    %c1_78 = arith.constant 1 : index
    %c0_79 = arith.constant 0 : index
    %c0_80 = arith.constant 0 : index
    %168 = vector.load %arg11[%c1_78, %c0_79, %c0_80] : memref<2x128x128xbf16, #tpu.memory_space<vmem>>, vector<1x128x128xbf16>
    %169 = vector.shape_cast %168 : vector<1x128x128xbf16> to vector<128x128xbf16>
    %170 = arith.extf %169 : vector<128x128xbf16> to vector<128x128xf32>
    %cst_81 = arith.constant 0.000000e+00 : f32
    %171 = vector.broadcast %cst_81 : f32 to vector<4x128xf32>
    %172 = vector.extract_strided_slice %159 {offsets = [0, 0], sizes = [4, 32], strides = [1, 1]} : vector<4x128xf32> to vector<4x32xf32>
    %173 = vector.extract_strided_slice %163 {offsets = [0, 0], sizes = [4, 32], strides = [1, 1]} : vector<4x128xf32> to vector<4x32xf32>
    %174 = vector.extract_strided_slice %167 {offsets = [0, 0], sizes = [4, 32], strides = [1, 1]} : vector<4x128xf32> to vector<4x32xf32>
    %cst_82 = arith.constant dense<0.000000e+00> : vector<4x4xf32>
    %175 = tpu.matmul %172, %173, %cst_82 {dimension_numbers = #tpu.dot_dimension_numbers<[1], [1], [0], [0], [0, 0, 1, 0], [], []>} : vector<4x32xf32>, vector<4x32xf32>, vector<4x4xf32> -> vector<4x4xf32>
    %cst_83 = arith.constant 0.176776692 : f32
    %176 = vector.broadcast %cst_83 : f32 to vector<4x4xf32>
    %177 = arith.mulf %175, %176 : vector<4x4xf32>
    %cst_84 = arith.constant dense<0xFF800000> : vector<4xf32>
    %178 = vector.multi_reduction <maximumf>, %177, %cst_84 [1] : vector<4x4xf32> to vector<4xf32>
    %179 = vector.shape_cast %178 : vector<4xf32> to vector<4x1xf32>
    %180 = vector.broadcast %179 : vector<4x1xf32> to vector<4x4xf32>
    %181 = arith.subf %177, %180 : vector<4x4xf32>
    %182 = math.exp %181 : vector<4x4xf32>
    %cst_85 = arith.constant dense<0.000000e+00> : vector<4xf32>
    %183 = vector.multi_reduction <add>, %182, %cst_85 [1] : vector<4x4xf32> to vector<4xf32>
    %184 = vector.shape_cast %183 : vector<4xf32> to vector<4x1xf32>
    %185 = tpu.reciprocal %184 {approx = true} : vector<4x1xf32> -> vector<4x1xf32>
    %186 = vector.broadcast %185 : vector<4x1xf32> to vector<4x4xf32>
    %187 = arith.mulf %182, %186 : vector<4x4xf32>
    %cst_86 = arith.constant dense<0.000000e+00> : vector<4x32xf32>
    %188 = tpu.matmul %187, %174, %cst_86 {dimension_numbers = #tpu.dot_dimension_numbers<[1], [0], [0], [1], [0, 0, 1, 1], [], []>} : vector<4x4xf32>, vector<4x32xf32>, vector<4x32xf32> -> vector<4x32xf32>
    %189 = vector.extract_strided_slice %170 {offsets = [0, 0], sizes = [32, 128], strides = [1, 1]} : vector<128x128xf32> to vector<32x128xf32>
    %cst_87 = arith.constant dense<0.000000e+00> : vector<4x128xf32>
    %190 = tpu.matmul %188, %189, %cst_87 {dimension_numbers = #tpu.dot_dimension_numbers<[1], [0], [0], [1], [0, 0, 1, 1], [], []>} : vector<4x32xf32>, vector<32x128xf32>, vector<4x128xf32> -> vector<4x128xf32>
    %191 = arith.addf %171, %190 : vector<4x128xf32>
    %192 = vector.extract_strided_slice %159 {offsets = [0, 32], sizes = [4, 32], strides = [1, 1]} : vector<4x128xf32> to vector<4x32xf32>
    %193 = vector.extract_strided_slice %163 {offsets = [0, 32], sizes = [4, 32], strides = [1, 1]} : vector<4x128xf32> to vector<4x32xf32>
    %194 = vector.extract_strided_slice %167 {offsets = [0, 32], sizes = [4, 32], strides = [1, 1]} : vector<4x128xf32> to vector<4x32xf32>
    %cst_88 = arith.constant dense<0.000000e+00> : vector<4x4xf32>
    %195 = tpu.matmul %192, %193, %cst_88 {dimension_numbers = #tpu.dot_dimension_numbers<[1], [1], [0], [0], [0, 0, 1, 0], [], []>} : vector<4x32xf32>, vector<4x32xf32>, vector<4x4xf32> -> vector<4x4xf32>
    %cst_89 = arith.constant 0.176776692 : f32
    %196 = vector.broadcast %cst_89 : f32 to vector<4x4xf32>
    %197 = arith.mulf %195, %196 : vector<4x4xf32>
    %cst_90 = arith.constant dense<0xFF800000> : vector<4xf32>
    %198 = vector.multi_reduction <maximumf>, %197, %cst_90 [1] : vector<4x4xf32> to vector<4xf32>
    %199 = vector.shape_cast %198 : vector<4xf32> to vector<4x1xf32>
    %200 = vector.broadcast %199 : vector<4x1xf32> to vector<4x4xf32>
    %201 = arith.subf %197, %200 : vector<4x4xf32>
    %202 = math.exp %201 : vector<4x4xf32>
    %cst_91 = arith.constant dense<0.000000e+00> : vector<4xf32>
    %203 = vector.multi_reduction <add>, %202, %cst_91 [1] : vector<4x4xf32> to vector<4xf32>
    %204 = vector.shape_cast %203 : vector<4xf32> to vector<4x1xf32>
    %205 = tpu.reciprocal %204 {approx = true} : vector<4x1xf32> -> vector<4x1xf32>
    %206 = vector.broadcast %205 : vector<4x1xf32> to vector<4x4xf32>
    %207 = arith.mulf %202, %206 : vector<4x4xf32>
    %cst_92 = arith.constant dense<0.000000e+00> : vector<4x32xf32>
    %208 = tpu.matmul %207, %194, %cst_92 {dimension_numbers = #tpu.dot_dimension_numbers<[1], [0], [0], [1], [0, 0, 1, 1], [], []>} : vector<4x4xf32>, vector<4x32xf32>, vector<4x32xf32> -> vector<4x32xf32>
    %209 = vector.extract_strided_slice %170 {offsets = [32, 0], sizes = [32, 128], strides = [1, 1]} : vector<128x128xf32> to vector<32x128xf32>
    %cst_93 = arith.constant dense<0.000000e+00> : vector<4x128xf32>
    %210 = tpu.matmul %208, %209, %cst_93 {dimension_numbers = #tpu.dot_dimension_numbers<[1], [0], [0], [1], [0, 0, 1, 1], [], []>} : vector<4x32xf32>, vector<32x128xf32>, vector<4x128xf32> -> vector<4x128xf32>
    %211 = arith.addf %191, %210 : vector<4x128xf32>
    %212 = vector.extract_strided_slice %159 {offsets = [0, 64], sizes = [4, 32], strides = [1, 1]} : vector<4x128xf32> to vector<4x32xf32>
    %213 = vector.extract_strided_slice %163 {offsets = [0, 64], sizes = [4, 32], strides = [1, 1]} : vector<4x128xf32> to vector<4x32xf32>
    %214 = vector.extract_strided_slice %167 {offsets = [0, 64], sizes = [4, 32], strides = [1, 1]} : vector<4x128xf32> to vector<4x32xf32>
    %cst_94 = arith.constant dense<0.000000e+00> : vector<4x4xf32>
    %215 = tpu.matmul %212, %213, %cst_94 {dimension_numbers = #tpu.dot_dimension_numbers<[1], [1], [0], [0], [0, 0, 1, 0], [], []>} : vector<4x32xf32>, vector<4x32xf32>, vector<4x4xf32> -> vector<4x4xf32>
    %cst_95 = arith.constant 0.176776692 : f32
    %216 = vector.broadcast %cst_95 : f32 to vector<4x4xf32>
    %217 = arith.mulf %215, %216 : vector<4x4xf32>
    %cst_96 = arith.constant dense<0xFF800000> : vector<4xf32>
    %218 = vector.multi_reduction <maximumf>, %217, %cst_96 [1] : vector<4x4xf32> to vector<4xf32>
    %219 = vector.shape_cast %218 : vector<4xf32> to vector<4x1xf32>
    %220 = vector.broadcast %219 : vector<4x1xf32> to vector<4x4xf32>
    %221 = arith.subf %217, %220 : vector<4x4xf32>
    %222 = math.exp %221 : vector<4x4xf32>
    %cst_97 = arith.constant dense<0.000000e+00> : vector<4xf32>
    %223 = vector.multi_reduction <add>, %222, %cst_97 [1] : vector<4x4xf32> to vector<4xf32>
    %224 = vector.shape_cast %223 : vector<4xf32> to vector<4x1xf32>
    %225 = tpu.reciprocal %224 {approx = true} : vector<4x1xf32> -> vector<4x1xf32>
    %226 = vector.broadcast %225 : vector<4x1xf32> to vector<4x4xf32>
    %227 = arith.mulf %222, %226 : vector<4x4xf32>
    %cst_98 = arith.constant dense<0.000000e+00> : vector<4x32xf32>
    %228 = tpu.matmul %227, %214, %cst_98 {dimension_numbers = #tpu.dot_dimension_numbers<[1], [0], [0], [1], [0, 0, 1, 1], [], []>} : vector<4x4xf32>, vector<4x32xf32>, vector<4x32xf32> -> vector<4x32xf32>
    %229 = vector.extract_strided_slice %170 {offsets = [64, 0], sizes = [32, 128], strides = [1, 1]} : vector<128x128xf32> to vector<32x128xf32>
    %cst_99 = arith.constant dense<0.000000e+00> : vector<4x128xf32>
    %230 = tpu.matmul %228, %229, %cst_99 {dimension_numbers = #tpu.dot_dimension_numbers<[1], [0], [0], [1], [0, 0, 1, 1], [], []>} : vector<4x32xf32>, vector<32x128xf32>, vector<4x128xf32> -> vector<4x128xf32>
    %231 = arith.addf %211, %230 : vector<4x128xf32>
    %232 = vector.extract_strided_slice %159 {offsets = [0, 96], sizes = [4, 32], strides = [1, 1]} : vector<4x128xf32> to vector<4x32xf32>
    %233 = vector.extract_strided_slice %163 {offsets = [0, 96], sizes = [4, 32], strides = [1, 1]} : vector<4x128xf32> to vector<4x32xf32>
    %234 = vector.extract_strided_slice %167 {offsets = [0, 96], sizes = [4, 32], strides = [1, 1]} : vector<4x128xf32> to vector<4x32xf32>
    %cst_100 = arith.constant dense<0.000000e+00> : vector<4x4xf32>
    %235 = tpu.matmul %232, %233, %cst_100 {dimension_numbers = #tpu.dot_dimension_numbers<[1], [1], [0], [0], [0, 0, 1, 0], [], []>} : vector<4x32xf32>, vector<4x32xf32>, vector<4x4xf32> -> vector<4x4xf32>
    %cst_101 = arith.constant 0.176776692 : f32
    %236 = vector.broadcast %cst_101 : f32 to vector<4x4xf32>
    %237 = arith.mulf %235, %236 : vector<4x4xf32>
    %cst_102 = arith.constant dense<0xFF800000> : vector<4xf32>
    %238 = vector.multi_reduction <maximumf>, %237, %cst_102 [1] : vector<4x4xf32> to vector<4xf32>
    %239 = vector.shape_cast %238 : vector<4xf32> to vector<4x1xf32>
    %240 = vector.broadcast %239 : vector<4x1xf32> to vector<4x4xf32>
    %241 = arith.subf %237, %240 : vector<4x4xf32>
    %242 = math.exp %241 : vector<4x4xf32>
    %cst_103 = arith.constant dense<0.000000e+00> : vector<4xf32>
    %243 = vector.multi_reduction <add>, %242, %cst_103 [1] : vector<4x4xf32> to vector<4xf32>
    %244 = vector.shape_cast %243 : vector<4xf32> to vector<4x1xf32>
    %245 = tpu.reciprocal %244 {approx = true} : vector<4x1xf32> -> vector<4x1xf32>
    %246 = vector.broadcast %245 : vector<4x1xf32> to vector<4x4xf32>
    %247 = arith.mulf %242, %246 : vector<4x4xf32>
    %cst_104 = arith.constant dense<0.000000e+00> : vector<4x32xf32>
    %248 = tpu.matmul %247, %234, %cst_104 {dimension_numbers = #tpu.dot_dimension_numbers<[1], [0], [0], [1], [0, 0, 1, 1], [], []>} : vector<4x4xf32>, vector<4x32xf32>, vector<4x32xf32> -> vector<4x32xf32>
    %249 = vector.extract_strided_slice %170 {offsets = [96, 0], sizes = [32, 128], strides = [1, 1]} : vector<128x128xf32> to vector<32x128xf32>
    %cst_105 = arith.constant dense<0.000000e+00> : vector<4x128xf32>
    %250 = tpu.matmul %248, %249, %cst_105 {dimension_numbers = #tpu.dot_dimension_numbers<[1], [0], [0], [1], [0, 0, 1, 1], [], []>} : vector<4x32xf32>, vector<32x128xf32>, vector<4x128xf32> -> vector<4x128xf32>
    %251 = arith.addf %231, %250 : vector<4x128xf32>
    %252 = vector.extract_strided_slice %155 {offsets = [3, 0], sizes = [1, 128], strides = [1, 1]} : vector<4x128xf32> to vector<1x128xf32>
    %253 = vector.broadcast %252 : vector<1x128xf32> to vector<4x128xf32>
    %254 = arith.addf %251, %253 : vector<4x128xf32>
    %c1_106 = arith.constant 1 : index
    %c0_107 = arith.constant 0 : index
    %c0_108 = arith.constant 0 : index
    %255 = vector.load %arg15[%c1_106, %c0_107, %c0_108] : memref<2x4x128xf32, #tpu.memory_space<vmem>>, vector<1x4x128xf32>
    %256 = vector.shape_cast %255 : vector<1x4x128xf32> to vector<4x128xf32>
    %257 = vector.shape_cast %254 : vector<4x128xf32> to vector<1x4x128xf32>
    tpu.vector_store %arg15[%c1_106, %c0_107, %c0_108], %257 {strides = array<i32>} : memref<2x4x128xf32, #tpu.memory_space<vmem>>, vector<1x4x128xf32>,
    return
  }
  func.func @transform_0(%arg0: i32) -> (i32, i32) {
    %c0_i32 = arith.constant 0 : i32
    %c0_i32_0 = arith.constant 0 : i32
    %c0_i32_1 = arith.constant 0 : i32
    return %c0_i32, %c0_i32_0 : i32, i32
  }
  func.func @transform_1(%arg0: i32) -> (i32, i32) {
    %c0_i32 = arith.constant 0 : i32
    %c0_i32_0 = arith.constant 0 : i32
    %c0_i32_1 = arith.constant 0 : i32
    return %c0_i32, %c0_i32_0 : i32, i32
  }
  func.func @transform_2(%arg0: i32) -> (i32, i32) {
    %c0_i32 = arith.constant 0 : i32
    %c0_i32_0 = arith.constant 0 : i32
    %c0_i32_1 = arith.constant 0 : i32
    return %c0_i32, %c0_i32_0 : i32, i32
  }
  func.func @transform_3(%arg0: i32) -> (i32, i32) {
    %c0_i32 = arith.constant 0 : i32
    %c0_i32_0 = arith.constant 0 : i32
    %c0_i32_1 = arith.constant 0 : i32
    return %c0_i32, %c0_i32_0 : i32, i32
  }
  func.func @transform_4(%arg0: i32) -> (i32, i32) {
    %c0_i32 = arith.constant 0 : i32
    %c0_i32_0 = arith.constant 0 : i32
    %c0_i32_1 = arith.constant 0 : i32
    return %c0_i32, %c0_i32_0 : i32, i32
  }
  func.func @transform_5(%arg0: i32) -> (i32, i32) {
    %c0_i32 = arith.constant 0 : i32
    %c0_i32_0 = arith.constant 0 : i32
    return %arg0, %c0_i32 : i32, i32
  }
  func.func @transform_6(%arg0: i32) -> (i32, i32) {
    %c0_i32 = arith.constant 0 : i32
    %c0_i32_0 = arith.constant 0 : i32
    %c0_i32_1 = arith.constant 0 : i32
    return %c0_i32, %c0_i32_0 : i32, i32
  }
  func.func @transform_7(%arg0: i32) -> (i32, i32) {
    %c0_i32 = arith.constant 0 : i32
    %c0_i32_0 = arith.constant 0 : i32
    %c0_i32_1 = arith.constant 0 : i32
    return %c0_i32, %c0_i32_0 : i32, i32
  }
  func.func @transform_8(%arg0: i32) -> (i32, i32, i32) {
    %c0_i32 = arith.constant 0 : i32
    %c0_i32_0 = arith.constant 0 : i32
    %c0_i32_1 = arith.constant 0 : i32
    return %arg0, %c0_i32, %c0_i32_0 : i32, i32, i32
  }
  func.func @transform_9(%arg0: i32) -> (i32, i32, i32) {
    %c0_i32 = arith.constant 0 : i32
    %c0_i32_0 = arith.constant 0 : i32
    %c0_i32_1 = arith.constant 0 : i32
    return %arg0, %c0_i32, %c0_i32_0 : i32, i32, i32
  }
  func.func @transform_10(%arg0: i32) -> (i32, i32, i32) {
    %c0_i32 = arith.constant 0 : i32
    %c0_i32_0 = arith.constant 0 : i32
    %c0_i32_1 = arith.constant 0 : i32
    return %arg0, %c0_i32, %c0_i32_0 : i32, i32, i32
  }
  func.func @transform_11(%arg0: i32) -> (i32, i32, i32) {
    %c0_i32 = arith.constant 0 : i32
    %c0_i32_0 = arith.constant 0 : i32
    %c0_i32_1 = arith.constant 0 : i32
    return %arg0, %c0_i32, %c0_i32_0 : i32, i32, i32
  }
  func.func @transform_12(%arg0: i32) -> (i32, i32, i32) {
    %c0_i32 = arith.constant 0 : i32
    %c0_i32_0 = arith.constant 0 : i32
    %c0_i32_1 = arith.constant 0 : i32
    return %arg0, %c0_i32, %c0_i32_0 : i32, i32, i32
  }
  func.func @transform_13(%arg0: i32) -> (i32, i32) {
    %c0_i32 = arith.constant 0 : i32
    %c0_i32_0 = arith.constant 0 : i32
    return %arg0, %c0_i32 : i32, i32
  }
  func.func @transform_14(%arg0: i32) -> (i32, i32, i32) {
    %c0_i32 = arith.constant 0 : i32
    %c0_i32_0 = arith.constant 0 : i32
    %c0_i32_1 = arith.constant 0 : i32
    return %arg0, %c0_i32, %c0_i32_0 : i32, i32, i32
  }
}

</mosaic_0001>

<bundles_post_ra>
// kernel: tpu_custom_call.1
= control target key start
LH: loop header
LB: loop body
LE: loop exit
PB: predicated region body
PF: predicated region fallthrough
CT: control target
= control target key end

     0   :  { %s5932_s0 = inlined_call_operand.vmem [shape: bf16[128,32], index: 0, kind: input, shape index: {}]   ;;  %s5933_s1 = inlined_call_operand.vmem [shape: bf16[32,32], index: 1, kind: input, shape index: {}]   ;;  %s5934_s2 = inlined_call_operand.vmem [shape: f32[1,32], index: 2, kind: input, shape index: {}]   ;;  %s5935_s3 = inlined_call_operand.vmem [shape: bf16[32,128], index: 3, kind: input, shape index: {}]   ;;  %s5936_s4 = inlined_call_operand.vmem [shape: f32[1,128], index: 4, kind: input, shape index: {}]   ;;  %s5937_s5 = inlined_call_operand.vmem [shape: bf16[320,64], index: 5, kind: input, shape index: {}]   ;;  %s5938_s6 = inlined_call_operand.vmem [shape: bf16[64,128], index: 6, kind: input, shape index: {}]   ;;  %s5939_s7 = inlined_call_operand.vmem [shape: f32[1,128], index: 7, kind: input, shape index: {}]   ;;  %s5940_s8 = inlined_call_operand.vmem [shape: bf16[4,4,128], index: 8, kind: input, shape index: {}]   ;;  %s5941_s9 = inlined_call_operand.hbm [shape: bf16[4,128,384], index: 9, kind: input, shape index: {}]   ;;  %s5942_s10 = inlined_call_operand.vmem [shape: bf16[4,128,128], index: 10, kind: input, shape index: {}]   ;;  %s5943_s11 = inlined_call_operand.vmem [shape: f32[4,4,128], index: 11, kind: input, shape index: {}]   ;;  %s5944_s12 = inlined_call_operand.hbm [shape: f32[2,2,128], index: 12, kind: output, shape index: {0}]   ;;  %s5945_s13 = inlined_call_operand.hbm [shape: f32[320,128], index: 13, kind: output, shape index: {1}]   ;;  %s5946_s14 = inlined_call_operand.hbm [shape: f32[4,4,128], index: 14, kind: output, shape index: {2}]  }
   0x1   :  { %5959 = sst [smem:[#allocation17_spill]] %s5932_s0 }
   0x2   :  { %5960 = sst [smem:[#allocation18_spill]] %s5933_s1 }
   0x3   :  { %5961 = sst [smem:[#allocation19_spill]] %s5934_s2 }
   0x4   :  { %5962 = sst [smem:[#allocation20_spill]] %s5935_s3 }
   0x5   :  { %5963 = sst [smem:[#allocation21_spill]] %s5936_s4 }
   0x6   :  { %5964 = sst [smem:[#allocation22_spill]] %s5937_s5 }
   0x7   :  { %5965 = sst [smem:[#allocation23_spill]] %s5944_s12 }
   0x8   :  { %5966 = sst [smem:[#allocation24_spill]] %s5946_s14 }
   0x9   :  { %20 = vsyncpa [#allocation3], 0 }
   0xa   :  { %22 = vsyncpa [#allocation3 + $0x1], 0 }
   0xb   :  { %23 = vsyncpa [#allocation4], 0 }
   0xc   :  { %25 = vsyncpa [#allocation4 + $0x1], 0 }
   0xd   :  { %26 = vsyncpa [#allocation7], 0 }
   0xe   :  { %28 = vsyncpa [#allocation7 + $0x1], 0  ;;  %s5172_s29 = smov 0   ;;  %s5174_s30 = smov 0  }
   0xf   :  { %s5176_s15 = smov 0   ;;  %s5178_s16 = smov 0  }
  0x10 LB: > { %5967 = sst [smem:[#allocation12_spill]] %s5067_s29  ;;  %s5193_s17 = sadd.s32 4294967295, %s5079_s16   ;;  %s5079_s16 = sphi %s5178_s16, %s5994_s16   ;;  %s5075_s15 = sphi %s5176_s15, %s5996_s15   ;;  %s5071_s30 = sphi %s5174_s30, %s5998_s30   ;;  %s5067_s29 = sphi %s5172_s29, %s5997_s29  }
  0x11   : > { %5968 = sst [smem:[#allocation13_spill]] %s5075_s15  ;;  %s5947_s18 = sadd.s32 4294967294, %s5079_s16  }
  0x12   : > { %s5197_s19 = sadd.s32 1, %s5079_s16   ;;  %s240_s20 = sadd.s32 1, %s5075_s15 }
  0x13   : > { %5969 = sst [smem:[#allocation14_spill]] %s5197_s19  ;;  %s237_s21 = ssub.s32 %s5079_s16, %s5197_s19 }
  0x14   : > { %p247_p0 = scmp.ne.s32.totalorder %s5075_s15, %s5071_s30  ;;  %p238_p1 = scmp.eq.s32.totalorder %s237_s21, 0 }
  0x15   : > { %p248_p2 = scmp.eq.s32.totalorder %s5079_s16, 0  ;;  %p253_p3 = scmp.ne.s32.totalorder %s5071_s30, %s5067_s29 }
  0x16   : > { %p254_p4 = scmp.eq.s32.totalorder %s5193_s17, 0  ;;  %p329_p7 = scmp.eq.s32.totalorder %s5193_s17, 1 }
  0x17   : > { %s5209_s22 = scalar_select %p238_p1, %s5075_s15, %s240_s20  }
  0x18   : > { %p249_p5 = por %p248_p2, %p247_p0  ;;  %p5211_p6 = por %p254_p4, %p253_p3 }
  0x19   : > { %5970 = sst [smem:[#allocation15_spill]] %s5209_s22  ;;  %p335_p8 = scmp.eq.s32.totalorder %s5947_s18, 1 }
  0x1a   : > { %p4753_p10 = scmp.lt.s32.totalorder %s5079_s16, 2  ;;  %p5220_p11 = por %p329_p7, %p247_p0 }
  0x1b   : > { %p5224_p12 = por %p335_p8, %p253_p3  ;;  %s446_s26 = sand.u32 1, %s5075_s15  }
  0x1c   : > { %s5972_s24 = scalar_select %p5220_p11, 1, 0 }
  0x1d   : > { %s5973_s25 = scalar_select %p5224_p12, 1, 0 }
  0x1e   : > { %s4728_s27 = smul.u32 6144, %s5079_s16  ;;  %p5235_p13 = pnand %p4753_p10, %p249_p5 }
  0x1f   : > { %5974 = sst [smem:[#allocation16_spill]] %s5973_s25  ;;  %s4727_s28 = smul.u32 384, %s446_s26 }
  0x20   : > { %s5233_s22 = scalar_lea.hbm %s5941_s9, %s4728_s27  ;;  %s5241_s15 = scalar_lea.sflag [#allocation3], %s446_s26 }
  0x21   : > { %s450_s19 = scalar_lea.vmem [#allocation2], %s4727_s28  ;;  %s4923_s29 = scalar_lea.hbm %s5233_s22, 6144 }
  0x22   : > { %s458_s25 = sshll.u32 %s450_s19, 4  ;;  %p4924_p0 = scmp.ne.s32.totalorder %s5233_s22, %s4923_s29  ;;  %s5239_s25 = int_to_ptr.vmem [resolvable:$true] %s458_s25 }
  0x23   : > { %p4925_p1 = pneg %p5235_p13  ;;  %s4928_s21 = scalar_lea.hbm %s5941_s9, 12288 }
  0x24   : > { %p4929_p4 = scmp.lt.u32.totalorder %s5233_s22, %s5941_s9  ;;  %p4930_p5 = scmp.lt.u32.totalorder %s4928_s21, %s4923_s29 }
  0x25   : > { %p4926_p2 = pnand %p4925_p1, %p4924_p0  ;;  %p4932_p8 = scmp.lt.u32.totalorder %s4923_s29, %s5233_s22 }
  0x26   : > { %p4931_p7 = por %p4930_p5, %p4929_p4 }
  0x27   : > { %p4927_p3 = pneg %p4926_p2 }
  0x28   : > { %p4933_p10 = por %p4932_p8, %p4931_p7 }
  0x2a   : > { %p4934_p9 = pnand %p4933_p10, %p4927_p3 }
  0x2c   : > { %4937 = shalt.err (!%p4934_p9)
}
  0x2d   : > { %s4938_s19 = scalar_lea.vmem %s5239_s25, 6144  ;;  %s5081_s26 = smov [#allocation2]  }
  0x2e   : > { %p4939_p0 = scmp.ne.s32.totalorder %s5239_s25, %s4938_s19  ;;  %s4943_s28 = sshll.u32 %s5081_s26, 4  ;;  %s4944_s28 = int_to_ptr.vmem [resolvable:$false] %s4943_s28 }
  0x2f   : > { %s4945_s12 = scalar_lea.vmem %s4944_s28, 12288  ;;  %p4946_p11 = scmp.lt.s32.totalorder %s5239_s25, %s4944_s28 }
  0x30   : > { %p4941_p2 = pnand %p4939_p0, %p4925_p1  ;;  %p4947_p4 = scmp.lt.s32.totalorder %s4945_s12, %s4938_s19 }
  0x32   : > { %p4942_p12 = pneg %p4941_p2  ;;  %p4948_p5 = por %p4947_p4, %p4946_p11 }
  0x34   : > { %p4949_p7 = pnand %p4948_p5, %p4942_p12 }
  0x36   : > { %4952 = shalt.err (!%p4949_p7)
}
  0x37   : > { %s5082_s14 = smov 192   ;;  %s5083_s29 = smov 12  }
  0x38   : > { %4742 = dma.hbm_to_vmem [thread:$0]  (!%p5235_p13), %s5233_s22, 6144, %s5239_s25, %s5241_s15, %s5082_s14, %s5082_s14, %s5083_s29  }
  0x39   : > { %p3991_p9 = scmp.ge.s32.totalorder %s5079_s16, 1  ;;  %p485_p1 = scmp.lt.s32.totalorder %s5079_s16, 3 }
  0x3b   : > { %p486_p3 = pnand %p3991_p9, %p485_p1 }
  0x3c   : > { %s5272_s27 = sand.u32 (!%p486_p3), 1, %s5071_s30  }
  0x3d   : > { %489 = sbr.rel (%p486_p3) target bundleno = 5283 (0x14a3), region = 68  ;;  %s492_s21 = scalar_lea.sflag (!%p486_p3), [#allocation3], %s5272_s27 }
  0x3e   : > { %s4729_s20 = smul.u32 (!%p486_p3), 384, %s5272_s27 }
  0x40   : > { %s5276_s19 = scalar_lea.vmem (!%p486_p3), [#allocation2], %s4729_s20 }
  0x44   : > { %5054 = dma.done.wait (%p5211_p6), %s492_s21, 6144  }
  0x45   : > { %5056 = vsyncadd (%p5211_p6), %s492_s21, 4294961152  ;;  %s5976_s1 = sld [smem:[#allocation18_spill]]  ;;  %vm679_vm0 = vcmask 261120   ;;  %s5977_s0 = sld [smem:[#allocation17_spill]]  ;;  %v4805_v3 = vld [vmem:[%s5276_s19 + $0x4] ss:$12 sps:$4 sm:$0xff]  }
  0x46   : > { %v4803_v5 = vld [vmem:[%s5276_s19] ss:$12 sps:$4 sm:$0xff]   ;;  %v4808_v7 = vld [vmem:[%s5276_s19 + $0x1c] ss:$12 sps:$4 sm:$0xff]   ;;  %v4806_v8 = vld [vmem:[%s5276_s19 + $0x18] ss:$12 sps:$4 sm:$0xff]  }
  0x47   : > { %v4813_v9 = vld [vmem:[%s5276_s19 + $0x34] ss:$12 sps:$4 sm:$0xff]   ;;  %v4811_v11 = vld [vmem:[%s5276_s19 + $0x30] ss:$12 sps:$4 sm:$0xff]   ;;  %v4816_v13 = vld [vmem:[%s5276_s19 + $0x4c] ss:$12 sps:$4 sm:$0xff]  }
  0x48   : > { %s3995_s22 = sshll.u32 %s5193_s17, 1  ;;  %v4814_v14 = vld [vmem:[%s5276_s19 + $0x48] ss:$12 sps:$4 sm:$0xff]   ;;  %v4821_v16 = vld [vmem:[%s5276_s19 + $0x64] ss:$12 sps:$4 sm:$0xff]   ;;  %v5084_v26 = vmov 0  }
  0x49   : > { %p5321_p6 = scmp.lt.s32.totalorder %s3995_s22, 3  ;;  %v4819_v17 = vld [vmem:[%s5276_s19 + $0x60] ss:$12 sps:$4 sm:$0xff]   ;;  %v4824_v19 = vld [vmem:[%s5276_s19 + $0x7c] ss:$12 sps:$4 sm:$0xff]   ;;  %v5085_v28 = vmov 0.0  }
  0x4a   : > { %v4822_v20 = vld [vmem:[%s5276_s19 + $0x78] ss:$12 sps:$4 sm:$0xff]   ;;  %v4829_v21 = vld [vmem:[%s5276_s19 + $0x94] ss:$12 sps:$4 sm:$0xff]   ;;  %v4827_v23 = vld [vmem:[%s5276_s19 + $0x90] ss:$12 sps:$4 sm:$0xff]  }
  0x4b   : > { %v4799_v0 = vld [vmem:[%s5976_s1] sm:$0xff]   ;;  %v4800_v1 = vld [vmem:[%s5976_s1 + $0x8] sm:$0xff]   ;;  %v4809_v6 = vld [vmem:[%s5977_s0 + $0x10] sm:$0xff]   ;;  %s6000_s22 = smov (!%p5321_p6, %s3995_s22), 3  ;;  %vm5086_vm1 = vmmov 0   ;;  %s5979_s3 = sld [smem:[#allocation20_spill]] }
  0x4c   : > { %4406 = vmatprep.subr.bf16.mxu0 %v4799_v0  ;;  %v4801_v2 = vld [vmem:[%s5977_s0] sm:$0xff]   ;;  %v4802_v4 = vld [vmem:[%s5977_s0 + $0x8] sm:$0xff]   ;;  %v4810_v10 = vld [vmem:[%s5977_s0 + $0x18] sm:$0xff]   ;;  %s3996_s20 = sshll.u32 %s6000_s22, 1  ;;  %4434 = vmatprep.mubr.msk.f32.mxu1 %vm5086_vm1, %v5085_v28  ;;  %v5087_v30 = vmov 0.0|0.0   ;;  %s5980_s2 = sld [smem:[#allocation19_spill]] }
  0x4d   : > { %4407 = vmatpush3.bf16.msra.mxu0 %v4799_v0  ;;  %4410 = vmatprep.mubr.msk.bf16.mxu0 %vm679_vm0, %v4801_v2  ;;  %v4817_v12 = vld [vmem:[%s5977_s0 + $0x20] sm:$0xff]   ;;  %v4818_v15 = vld [vmem:[%s5977_s0 + $0x28] sm:$0xff]   ;;  %v4825_v18 = vld [vmem:[%s5977_s0 + $0x30] sm:$0xff]   ;;  %s5350_s18 = scalar_lea.vmem %s5940_s8, %s3996_s20  ;;  %s4001_s29 = sshll.u32 %s6000_s22, 2  ;;  %vm862_vm2 = vcmask 1040384   ;;  %vm1068_vm3 = vcmask 523264  }
  0x4e   : > { %4408 = vmatprep.subr.bf16.mxu0 %v4800_v1  ;;  %v4826_v22 = vld [vmem:[%s5977_s0 + $0x38] sm:$0xff]   ;;  %v4830_v25 = vld [vmem:[%s5276_s19 + $0xa8] ss:$12 sps:$4 sm:$0xff]   ;;  %v5353_v27 = vld [vmem:[%s5350_s18] sm:$0x3]  ;;  %4673 = vmatprep.subr.bf16.mxu1 %v5087_v30  ;;  %s5402_s15 = scalar_lea.vmem %s5943_s11, %s4001_s29  ;;  %s5956_s25 = smov 96  }
  0x4f   : > { %v4832_v24 = vld [vmem:[%s5276_s19 + $0xac] ss:$12 sps:$4 sm:$0xff]   ;;  %s571_s14 = smul.u32 20, %s5193_s17  ;;  %s5981_s5 = sld [smem:[#allocation22_spill]]  ;;  %vm1599_vm4 = vcmask 27648   ;;  %vm1615_vm5 = vcmask 1043456  }
  0x50   : > { %s5982_s4 = sld [smem:[#allocation21_spill]]  ;;  %s3992_s29 = sshll.u32 %s5272_s27, 1  ;;  %vm1611_vm6 = vcmask 31744  }
  0x51   : > { %4409 = vmatpush3.bf16.msra.mxu0 %v4800_v1  ;;  %v4200_v29 = vld [vmem:[%s5979_s3] sm:$0xff]   ;;  %v4271_v31 = vld [vmem:[%s5979_s3 + $0x8] sm:$0xff]   ;;  %p572_p11 = scmp.lt.s32.totalorder %s571_s14, 39  ;;  %s5506_s20 = scalar_lea.vmem [#allocation5], %s3992_s29 }
  0x52   : > { %1393 = vmatprep.subr.bf16.mxu0 %v4805_v3  ;;  %4675 = vmatpush3.bf16.msra.mxu1 %v4200_v29  ;;  %v5372_v32 = vld [vmem:[%s5980_s2] ss:$0 sm:$0xff]  ;;  %s5090_s26 = smov 32   ;;  %s3755_s28 = sand.u32 1, %s5193_s17  }
  0x53   : > { %4676 = vmatprep.subr.bf16.mxu1 %v5087_v30  ;;  %s6002_s14 = smov (!%p572_p11, %s571_s14), 39  ;;  %p5984_p13 = scmp.ne.s32.totalorder %s5972_s24, 0 }
  0x54   : > { %4411 = vmatmul.mubr.msk.bf16.vlgmr.msra.gmra.mrb[0].mxu0 %vm679_vm0, %v4802_v4  ;;  %s3994_s21 = sshll.u32 %s6002_s14, 2 }
  0x55   : > { %1394 = vmatpush1.bf16.msra.mxu0 %v4803_v5  ;;  %4414 = vmatprep.mubr.msk.bf16.mxu0 %vm679_vm0, %v4809_v6  ;;  %s5457_s12 = scalar_lea.vmem %s5981_s5, %s3994_s21  ;;  %s4730_s21 = smul.u32 160, %s5272_s27 }
  0x56   : > { %1395 = vmatprep.subr.bf16.mxu0 %v4808_v7  ;;  %4678 = vmatpush3.bf16.msra.mxu1 %v4271_v31 }
  0x57   : > { %s5517_s23 = scalar_lea.vmem [#allocation6], %s4730_s21  ;;  %s5958_s21 = smov 64  }
  0x59   : > { %1396 = vmatpush1.bf16.msra.mxu0 %v4806_v8 }
  0x5a   : > { %1397 = vmatprep.subr.bf16.mxu0 %v4813_v9 }
  0x5c   : > { %4415 = vmatmul.mubr.msk.bf16.gmra.mrb[4].mxu0 %vm679_vm0, %v4810_v10  ;;  %v1475_v10 = vlaneseq }
  0x5d   : > { %1398 = vmatpush1.bf16.msra.mxu0 %v4811_v11  ;;  %4418 = vmatprep.mubr.msk.bf16.mxu0 %vm679_vm0, %v4817_v12 }
  0x5e   : > { %1399 = vmatprep.subr.bf16.mxu0 %v4816_v13 }
  0x61   : > { %1400 = vmatpush1.bf16.msra.mxu0 %v4814_v14 }
  0x62   : > { %1401 = vmatprep.subr.bf16.mxu0 %v4821_v16 }
  0x64   : > { %4419 = vmatmul.mubr.msk.bf16.gmra.mrb[8].mxu0 %vm679_vm0, %v4818_v15 }
  0x65   : > { %1402 = vmatpush1.bf16.msra.mxu0 %v4819_v17  ;;  %4422 = vmatprep.mubr.msk.bf16.mxu0 %vm679_vm0, %v4825_v18 }
  0x66   : > { %1403 = vmatprep.subr.bf16.mxu0 %v4824_v19 }
  0x69   : > { %1404 = vmatpush1.bf16.msra.mxu0 %v4822_v20  ;;  %v5395_v20 = vshrl.u32 %v1475_v10, 7 }
  0x6a   : > { %1405 = vmatprep.subr.bf16.mxu0 %v4829_v21 }
  0x6c   : > { %4423 = vmatmul.mubr.msk.bf16.gmra.mrb[12].mxu0 %vm679_vm0, %v4826_v22 }
  0x6d   : > { %1406 = vmatpush1.bf16.msra.mxu0 %v4827_v23  ;;  %1425 = vmatprep.mubr.bf16.mxu0 %v5084_v26 }
  0x6e   : > { %1407 = vmatprep.subr.bf16.mxu0 %v4832_v24 }
  0x71   : > { %1408 = vmatpush1.bf16.msra.mxu0 %v4830_v25 }
  0x72   : > { %4485 = vmatprep.subr.mxu0 %v5085_v28 }
  0x74   : > { %1426 = vmatmul.mubr.bf16.vlgmr.msra.gmra.mrb[16].mxu0 %v5353_v27 }
  0x75   : > { %4487 = vmatprep.mubr.msk.f32.mxu0 %vm5086_vm1, %v5085_v28 }
 0x127   : > { %v4412_v33 = vpop.f32.mrb[0].mxu0 }
 0x128   : > { %v738_v34 = vpop.f32.mrb[1].mxu0  ;;  %v747_v35 = vadd.f32 %v4412_v33, %v5372_v32 }
 0x129   : > { %v739_v36 = vadd.f32 %v5372_v32, %v738_v34  ;;  %v4413_v37 = vpop.f32.mrb[2].mxu0 }
 0x12a   : > { %v741_v38 = vpop.f32.mrb[3].mxu0  ;;  %v750_v40 = vadd.f32 %v4413_v37, %v5372_v32  ;;  %v803_v42 = vmax.f32 %v747_v35, 0.0 }
 0x12b   : > { %v801_v39 = vmax.f32 %v739_v36, 0.0  ;;  %v742_v41 = vadd.f32 %v5372_v32, %v741_v38  ;;  %v1482_v36 = vsub.s32 1, %v5395_v20 }
 0x12c   : > { %v804_v45 = vmax.f32 %v750_v40, 0.0  ;;  %v820_v50 = vsel %vm679_vm0, %v803_v42, 0.0  ;;  %v5409_v40 = vld [vmem:[%s5402_s15] sm:$0xf] }
 0x12d   : > { %v802_v43 = vmax.f32 %v742_v41, 0.0  ;;  %v817_v44 = vsel %vm679_vm0, %v801_v39, 0.0 }
 0x12e   : > { %v822_v56 = vsel %vm679_vm0, %v804_v45, 0.0 }
 0x12f   : > { %v818_v46 = vsel %vm679_vm0, %v802_v43, 0.0  ;;  %v4416_v47 = vpop.f32.mrb[4].mxu0 }
 0x130   : > { %v819_v48 = vadd.f32 %v818_v46, %v817_v44  ;;  %v754_v49 = vpop.f32.mrb[5].mxu0  ;;  %v763_v51 = vadd.f32 %v4416_v47, %v5372_v32  ;;  %v1477_v46 = vsub.s32 0, %v5395_v20 }
 0x131   : > { %v755_v52 = vadd.f32 %v5372_v32, %v754_v49  ;;  %v4417_v53 = vpop.f32.mrb[6].mxu0 }
 0x132   : > { %v821_v54 = vadd.f32 %v820_v50, %v819_v48  ;;  %v757_v55 = vpop.f32.mrb[7].mxu0  ;;  %v766_v58 = vadd.f32 %v4417_v53, %v5372_v32  ;;  %v807_v61 = vmax.f32 %v763_v51, 0.0  ;;  %v1483_v50 = vrot.slane %v5409_v40, %v1482_v36 }
 0x133   : > { %v805_v57 = vmax.f32 %v755_v52, 0.0  ;;  %v758_v59 = vadd.f32 %v5372_v32, %v757_v55 }
 0x134   : > { %v823_v60 = vadd.f32 %v822_v56, %v821_v54  ;;  %v808_v1 = vmax.f32 %v766_v58, 0.0  ;;  %v828_v6 = vsel %vm679_vm0, %v807_v61, 0.0 }
 0x135   : > { %v824_v62 = vsel %vm679_vm0, %v805_v57, 0.0  ;;  %v806_v63 = vmax.f32 %v758_v59, 0.0 }
 0x136   : > { %v825_v0 = vadd.f32 %v824_v62, %v823_v60  ;;  %v830_v13 = vsel %vm679_vm0, %v808_v1, 0.0 }
 0x137   : > { %v826_v2 = vsel %vm679_vm0, %v806_v63, 0.0  ;;  %v4420_v3 = vpop.f32.mrb[8].mxu0 }
 0x138   : > { %v827_v4 = vadd.f32 %v826_v2, %v825_v0  ;;  %v770_v5 = vpop.f32.mrb[9].mxu0  ;;  %v779_v7 = vadd.f32 %v4420_v3, %v5372_v32 }
 0x139   : > { %v771_v8 = vadd.f32 %v5372_v32, %v770_v5  ;;  %v4421_v9 = vpop.f32.mrb[10].mxu0 }
 0x13a   : > { %v829_v11 = vadd.f32 %v828_v6, %v827_v4  ;;  %v773_v12 = vpop.f32.mrb[11].mxu0  ;;  %v782_v15 = vadd.f32 %v4421_v9, %v5372_v32  ;;  %v811_v18 = vmax.f32 %v779_v7, 0.0 }
 0x13b   : > { %v809_v14 = vmax.f32 %v771_v8, 0.0  ;;  %v774_v16 = vadd.f32 %v5372_v32, %v773_v12 }
 0x13c   : > { %v831_v17 = vadd.f32 %v830_v13, %v829_v11  ;;  %v812_v22 = vmax.f32 %v782_v15, 0.0  ;;  %v843_v31 = vsel %vm679_vm0, %v811_v18, 0.0  ;;  %v4833_v15 = vld [vmem:[%s5938_s6] sm:$0xff]   ;;  %v4836_v18 = vld [vmem:[%s5938_s6 + $0x18] sm:$0xff]  }
 0x13d   : > { %v810_v19 = vmax.f32 %v774_v16, 0.0  ;;  %v840_v21 = vsel %vm679_vm0, %v809_v14, 0.0  ;;  %v4834_v16 = vld [vmem:[%s5938_s6 + $0x8] sm:$0xff]   ;;  %4437 = vmatprep.subr.bf16.mxu1 %v4833_v15 }
 0x13e   : > { %v832_v37 = vrot.slane %v831_v17, 4  ;;  %v845_v41 = vsel %vm679_vm0, %v812_v22, 0.0  ;;  %v4838_v22 = vld [vmem:[%s5457_s12 + $0x8] sm:$0xff]  }
 0x13f   : > { %v841_v23 = vsel %vm679_vm0, %v810_v19, 0.0  ;;  %v4424_v24 = vpop.f32.mrb[12].mxu0  ;;  %v4837_v19 = vld [vmem:[%s5457_s12] sm:$0xff]  }
 0x140   : > { %v842_v25 = vadd.f32 %v841_v23, %v840_v21  ;;  %v786_v29 = vpop.f32.mrb[13].mxu0  ;;  %v795_v33 = vadd.f32 %v4424_v24, %v5372_v32  ;;  %v833_v51 = vadd.f32 %v832_v37, %v831_v17  ;;  %v4835_v17 = vld [vmem:[%s5938_s6 + $0x10] sm:$0xff]   ;;  %v4842_v24 = vld [vmem:[%s5276_s19 + $0x20] ss:$12 sps:$4 sm:$0xff]  }
 0x141   : > { %v787_v34 = vadd.f32 %v5372_v32, %v786_v29  ;;  %v4425_v35 = vpop.f32.mrb[14].mxu0  ;;  %v4840_v21 = vld [vmem:[%s5276_s19 + $0x8] ss:$12 sps:$4 sm:$0xff]   ;;  %v4843_v29 = vld [vmem:[%s5457_s12 + $0x20] sm:$0xff]  }
 0x142   : > { %v844_v38 = vadd.f32 %v843_v31, %v842_v25  ;;  %v789_v39 = vpop.f32.mrb[15].mxu0  ;;  %v798_v43 = vadd.f32 %v4425_v35, %v5372_v32  ;;  %v815_v47 = vmax.f32 %v795_v33, 0.0  ;;  %v834_v61 = vrot.slane %v833_v51, 2  ;;  %v4839_v23 = vld [vmem:[%s5457_s12 + $0x10] sm:$0xff]   ;;  %v4841_v25 = vld [vmem:[%s5457_s12 + $0x18] sm:$0xff]  }
 0x143   : > { %v813_v42 = vmax.f32 %v787_v34, 0.0  ;;  %v790_v44 = vadd.f32 %v5372_v32, %v789_v39  ;;  %v1478_v32 = vrot.slane %v5409_v40, %v1477_v46  ;;  %v4845_v31 = vld [vmem:[%s5276_s19 + $0x38] ss:$12 sps:$4 sm:$0xff]   ;;  %v4846_v33 = vld [vmem:[%s5276_s19 + $0x50] ss:$12 sps:$4 sm:$0xff]   ;;  %v4844_v34 = vld [vmem:[%s5457_s12 + $0x28] sm:$0xff]  }
 0x144   : > { %v846_v45 = vadd.f32 %v845_v41, %v844_v38  ;;  %v816_v53 = vmax.f32 %v798_v43, 0.0  ;;  %v851_v58 = vsel %vm679_vm0, %v815_v47, 0.0  ;;  %v835_v4 = vadd.f32 %v834_v61, %v833_v51  ;;  %v4847_v35 = vld [vmem:[%s5457_s12 + $0x30] sm:$0xff]   ;;  %v4850_v38 = vld [vmem:[%s5276_s19 + $0x80] ss:$12 sps:$4 sm:$0xff]   ;;  %v4848_v39 = vld [vmem:[%s5457_s12 + $0x38] sm:$0xff]  }
 0x145   : > { %v847_v48 = vsel %vm679_vm0, %v813_v42, 0.0  ;;  %v814_v49 = vmax.f32 %v790_v44, 0.0  ;;  %v4849_v37 = vld [vmem:[%s5276_s19 + $0x68] ss:$12 sps:$4 sm:$0xff]   ;;  %v4851_v41 = vld [vmem:[%s5457_s12 + $0x40] sm:$0xff]  }
 0x146   : > { %v848_v52 = vadd.f32 %v847_v48, %v846_v45  ;;  %v853_v0 = vsel %vm679_vm0, %v816_v53, 0.0  ;;  %v836_v7 = vrot.slane %v835_v4, 1  ;;  %v4853_v42 = vld [vmem:[%s5276_s19 + $0x98] ss:$12 sps:$4 sm:$0xff]   ;;  %v4854_v43 = vld [vmem:[%s5276_s19 + $0xb0] ss:$12 sps:$4 sm:$0xff]  }
 0x147   : > { %v849_v54 = vsel %vm679_vm0, %v814_v49, 0.0  ;;  %v1427_v55 = vpop.f32.mrb[16].mxu0  ;;  %v4852_v44 = vld [vmem:[%s5457_s12 + $0x48] sm:$0xff]   ;;  %s4196_s12 = sshll.u32 %s6000_s22, 6  ;;  %s5983_s22 = smov 96  }
 0x148   : > { %v850_v56 = vadd.f32 %v849_v54, %v848_v52  ;;  %v1429_v57 = vpop.f32.mrb[17].mxu0  ;;  %v5431_v2 = vadd.f32 %v1478_v32, %v1427_v55  ;;  %v837_v9 = vadd.f32 %v836_v7, %v835_v4  ;;  %v5513_v32 = vld [vmem:[%s5939_s7] ss:$0 sm:$0xff]  ;;  %s5571_s29 = scalar_lea.vmem %s5942_s10, %s4196_s12  ;;  %s3787_s12 = sshll.u32 %s5517_s23, 4  ;;  %s5823_s12 = int_to_ptr.vmem [resolvable:$true] %s3787_s12 }
 0x149   : > { %v5424_v59 = vadd.f32 %v1483_v50, %v1429_v57  ;;  %v1431_v60 = vpop.f32.mrb[18].mxu0  ;;  %v4021_v50 = vld [vmem:[%s5982_s4] ss:$0 sm:$0xff] }
 0x14a   : > { %v852_v62 = vadd.f32 %v851_v58, %v850_v56  ;;  %v1432_v63 = vpop.f32.mrb[19].mxu0  ;;  %v839_v12 = vmul.f32 0.015625, %v837_v9 }
 0x14b   : > { %1691 = vrot.lane.b32.xlu1 %v5424_v59, %s5956_s25  ;;  %4486 = vmatpush3.xpose.msk.msra.mxu0 %vm679_vm0, %v5424_v59 }
 0x14c   : > { %v854_v1 = vadd.f32 %v853_v0, %v852_v62  ;;  %4490 = vmatprep.subr.mxu0 %v5085_v28 }
 0x14e   : > { %v855_v3 = vrot.slane %v854_v1, 4  ;;  %4488 = vmatmul.mubr.msk.f32.vlgmr.msra.gmra.mrb[20].mxu0 %vm679_vm0, %v5431_v2 }
 0x14f   : > { %1689 = vrot.lane.b32.xlu1 %v5431_v2, %s5956_s25  ;;  %4492 = vmatprep.mubr.msk.f32.mxu0 %vm5086_vm1, %v5085_v28 }
 0x150   : > { %v856_v5 = vadd.f32 %v855_v3, %v854_v1 }
 0x152   : > { %v857_v6 = vrot.slane %v856_v5, 2 }
 0x154   : > { %v858_v8 = vadd.f32 %v857_v6, %v856_v5 }
 0x156   : > { %v859_v10 = vrot.slane %v858_v8, 1 }
 0x158   : > { %v860_v11 = vadd.f32 %v859_v10, %v858_v8 }
 0x15a   : > { %v861_v13 = vmul.f32 0.015625, %v860_v11 }
 0x15c   : > { %v863_v14 = vsel %vm862_vm2, %v839_v12, %v861_v13 }
 0x15d   : > { %4435 = vmatmul.mubr.msk.f32.vlgmr.msra.gmra.mrb[0].mxu1 %vm679_vm0, %v863_v14 }
 0x15e   : > { %4438 = vmatpush3.bf16.msra.mxu1 %v4833_v15  ;;  %4445 = vmatprep.mubr.msk.bf16.mxu1 %vm1068_vm3, %v4837_v19 }
 0x15f   : > { %4439 = vmatprep.subr.bf16.mxu1 %v4834_v16 }
 0x162   : > { %4440 = vmatpush3.bf16.msra.mxu1 %v4834_v16 }
 0x163   : > { %4441 = vmatprep.subr.bf16.mxu1 %v4835_v17 }
 0x166   : > { %4442 = vmatpush3.bf16.msra.mxu1 %v4835_v17 }
 0x167   : > { %4443 = vmatprep.subr.bf16.mxu1 %v4836_v18 }
 0x16a   : > { %4444 = vmatpush3.bf16.msra.mxu1 %v4836_v18 }
 0x16b   : > { %4465 = vmatprep.subr.bf16.mxu1 %v5085_v28 }
 0x16d   : > { %4446 = vmatmul.mubr.msk.bf16.vlgmr.msra.gmra.mrb[4].mxu1 %vm1068_vm3, %v4838_v22 }
 0x16e   : > { %4449 = vmatprep.mubr.msk.bf16.mxu1 %vm1068_vm3, %v4839_v23  ;;  %4466 = vmatpush3.bf16.msra.mxu1 %v4840_v21 }
 0x16f   : > { %4467 = vmatprep.subr.bf16.mxu1 %v5085_v28 }
 0x172   : > { %4468 = vmatpush3.bf16.msra.mxu1 %v4842_v24 }
 0x173   : > { %4469 = vmatprep.subr.bf16.mxu1 %v5085_v28 }
 0x175   : > { %4450 = vmatmul.mubr.msk.bf16.gmra.mrb[8].mxu1 %vm1068_vm3, %v4841_v25 }
 0x176   : > { %4453 = vmatprep.mubr.msk.bf16.mxu1 %vm1068_vm3, %v4843_v29  ;;  %4470 = vmatpush3.bf16.msra.mxu1 %v4845_v31 }
 0x177   : > { %4471 = vmatprep.subr.bf16.mxu1 %v5085_v28 }
 0x17a   : > { %4472 = vmatpush3.bf16.msra.mxu1 %v4846_v33 }
 0x17b   : > { %4473 = vmatprep.subr.bf16.mxu1 %v5085_v28 }
 0x17d   : > { %4454 = vmatmul.mubr.msk.bf16.gmra.mrb[12].mxu1 %vm1068_vm3, %v4844_v34 }
 0x17e   : > { %4457 = vmatprep.mubr.msk.bf16.mxu1 %vm1068_vm3, %v4847_v35  ;;  %4474 = vmatpush3.bf16.msra.mxu1 %v4849_v37 }
 0x17f   : > { %4475 = vmatprep.subr.bf16.mxu1 %v5085_v28 }
 0x182   : > { %4476 = vmatpush3.bf16.msra.mxu1 %v4850_v38 }
 0x183   : > { %4477 = vmatprep.subr.bf16.mxu1 %v5085_v28 }
 0x185   : > { %4458 = vmatmul.mubr.msk.bf16.gmra.mrb[16].mxu1 %vm1068_vm3, %v4848_v39 }
 0x186   : > { %4461 = vmatprep.mubr.msk.bf16.mxu1 %vm1068_vm3, %v4851_v41  ;;  %4478 = vmatpush3.bf16.msra.mxu1 %v4853_v42 }
 0x187   : > { %4479 = vmatprep.subr.bf16.mxu1 %v5085_v28 }
 0x18a   : > { %4480 = vmatpush3.bf16.msra.mxu1 %v4854_v43 }
 0x18b   : > { %4685 = vmatprep.subr.bf16.mxu1 %v5087_v30 }
 0x18d   : > { %4462 = vmatmul.mubr.msk.bf16.gmra.mrb[20].mxu1 %vm1068_vm3, %v4852_v44 }
 0x18e   : > { %4481 = vmatprep.mubr.msk.bf16.mxu1 %vm5086_vm1, %v5085_v28 }
 0x195   : > { %4482 = vmatmul.mubr.bf16.vlgmr.msra.gmra.mrb[24].mxu1 %v5353_v27 }
 0x196   : > { %4524 = vmatprep.mubr.msk.f32.mxu1 %vm5086_vm1, %v5085_v28 }
 0x221   : > { %v1594_v45 = vpop.f32.mrb[20].mxu0 }
 0x222   : > { %v1598_v47 = vmul.f32 0.17677669, %v1594_v45  ;;  %v4489_v48 = vpop.f32.mrb[21].mxu0 }
 0x224   : > { %v1600_v49 = vsel %vm1599_vm4, %v1598_v47, -inf }
 0x225   : > { %1601 = vmax.xlane.f32.xlu0 %v1600_v49  ;;  %v1487_v49 = vsub.s32 2, %v5395_v20 }
 0x230   : > { %v948_v51 = vpop.f32.mrb[0].mxu1 }
 0x231   : > { %v949_v52 = vadd.f32 %v4021_v50, %v948_v51  ;;  %v4436_v53 = vpop.f32.mrb[1].mxu1  ;;  %v1488_v51 = vrot.slane %v5409_v40, %v1487_v49 }
 0x233   : > { %v4023_v27 = vmul.f32 -1.442695, %v949_v52 }
 0x235   : > { %4887 = vpow2.f32 %v4023_v27 }
 0x23f   : > { %v4888_v54 = vpop.eup %4887 }
 0x240   : > { %v955_v55 = vadd.f32 1.0, %v4888_v54  ;;  %v4447_v57 = vpop.f32.mrb[4].mxu1 }
 0x241   : > { %v1142_v58 = vadd.f32 %v4447_v57, %v5513_v32  ;;  %v1133_v60 = vpop.f32.mrb[5].mxu1 }
 0x242   : > { %4889 = vrcp.f32 %v955_v55  ;;  %v1134_v61 = vadd.f32 %v5513_v32, %v1133_v60  ;;  %v4448_v62 = vpop.f32.mrb[6].mxu1  ;;  %v4208_v55 = vld [vmem:[%s5571_s29] sm:$0xff]  }
 0x243   : > { %1214 = vst [vmem:[%s5517_s23 + $0x10] sm:$0xff] %v1142_v58  ;;  %v1145_v63 = vadd.f32 %v4448_v62, %v5513_v32  ;;  %v1136_v0 = vpop.f32.mrb[7].mxu1  ;;  %4687 = vmatpush3.bf16.msra.mxu1 %v4208_v55  ;;  %v1692_v58 = vpop.permute.xlu1 %1691 }
 0x244   : > { %1212 = vst [vmem:[%s5517_s23] sm:$0xff] %v1134_v61  ;;  %v1137_v1 = vadd.f32 %v5513_v32, %v1136_v0  ;;  %4688 = vmatprep.subr.bf16.mxu1 %v5087_v30 }
 0x245   : > { %1215 = vst [vmem:[%s5517_s23 + $0x18] sm:$0xff] %v1145_v63 }
 0x246   : > { %1213 = vst [vmem:[%s5517_s23 + $0x8] sm:$0xff] %v1137_v1 }
 0x247   : > { %v1690_v61 = vpop.permute.xlu1 %1689 }
 0x248   : > { %v4451_v3 = vpop.f32.mrb[8].mxu1 }
 0x249   : > { %v1158_v4 = vadd.f32 %v4451_v3, %v5513_v32  ;;  %v1149_v5 = vpop.f32.mrb[9].mxu1 }
 0x24a   : > { %v1150_v6 = vadd.f32 %v5513_v32, %v1149_v5  ;;  %v4452_v7 = vpop.f32.mrb[10].mxu1 }
 0x24b   : > { %1218 = vst [vmem:[%s5517_s23 + $0x30] sm:$0xff] %v1158_v4  ;;  %v1161_v9 = vadd.f32 %v4452_v7, %v5513_v32  ;;  %v1152_v10 = vpop.f32.mrb[11].mxu1 }
 0x24c   : > { %v4890_v56 = vpop.eup %4889  ;;  %1216 = vst [vmem:[%s5517_s23 + $0x20] sm:$0xff] %v1150_v6  ;;  %v1153_v12 = vadd.f32 %v5513_v32, %v1152_v10 }
 0x24d   : > { %958 = vst [vmem:[%s5506_s20] sm:$0x3] %v4890_v56  ;;  %1219 = vst [vmem:[%s5517_s23 + $0x38] sm:$0xff] %v1161_v9  ;;  %v4272_v56 = vld [vmem:[%s5571_s29 + $0x8] sm:$0xff]  }
 0x24e   : > { %1217 = vst [vmem:[%s5517_s23 + $0x28] sm:$0xff] %v1153_v12  ;;  %4690 = vmatpush3.bf16.msra.mxu1 %v4272_v56 }
 0x24f   : > { %4691 = vmatprep.subr.bf16.mxu1 %v5087_v30 }
 0x250   : > { %v4455_v14 = vpop.f32.mrb[12].mxu1 }
 0x251   : > { %v1174_v15 = vadd.f32 %v4455_v14, %v5513_v32  ;;  %v1165_v16 = vpop.f32.mrb[13].mxu1 }
 0x252   : > { %v1166_v17 = vadd.f32 %v5513_v32, %v1165_v16  ;;  %v4456_v18 = vpop.f32.mrb[14].mxu1  ;;  %v4273_v16 = vld [vmem:[%s5571_s29 + $0x10] sm:$0xff]  }
 0x253   : > { %1222 = vst [vmem:[%s5517_s23 + $0x50] sm:$0xff] %v1174_v15  ;;  %v1177_v19 = vadd.f32 %v4456_v18, %v5513_v32  ;;  %v1168_v21 = vpop.f32.mrb[15].mxu1 }
 0x254   : > { %1220 = vst [vmem:[%s5517_s23 + $0x40] sm:$0xff] %v1166_v17  ;;  %v1169_v22 = vadd.f32 %v5513_v32, %v1168_v21  ;;  %v4274_v17 = vld [vmem:[%s5571_s29 + $0x18] sm:$0xff]  }
 0x255   : > { %1223 = vst [vmem:[%s5517_s23 + $0x58] sm:$0xff] %v1177_v19 }
 0x256   : > { %1221 = vst [vmem:[%s5517_s23 + $0x48] sm:$0xff] %v1169_v22 }
 0x258   : > { %v4459_v23 = vpop.f32.mrb[16].mxu1 }
 0x259   : > { %v1190_v24 = vadd.f32 %v4459_v23, %v5513_v32  ;;  %v1181_v25 = vpop.f32.mrb[17].mxu1 }
 0x25a   : > { %v1182_v31 = vadd.f32 %v5513_v32, %v1181_v25  ;;  %v4460_v33 = vpop.f32.mrb[18].mxu1 }
 0x25b   : > { %1226 = vst [vmem:[%s5517_s23 + $0x70] sm:$0xff] %v1190_v24  ;;  %v1193_v35 = vadd.f32 %v4460_v33, %v5513_v32  ;;  %v1184_v37 = vpop.f32.mrb[19].mxu1 }
 0x25c   : > { %1224 = vst [vmem:[%s5517_s23 + $0x60] sm:$0xff] %v1182_v31  ;;  %v1185_v38 = vadd.f32 %v5513_v32, %v1184_v37 }
 0x25d   : > { %1227 = vst [vmem:[%s5517_s23 + $0x78] sm:$0xff] %v1193_v35 }
 0x25e   : > { %1225 = vst [vmem:[%s5517_s23 + $0x68] sm:$0xff] %v1185_v38 }
 0x260   : > { %v4463_v39 = vpop.f32.mrb[20].mxu1 }
 0x261   : > { %v1206_v41 = vadd.f32 %v4463_v39, %v5513_v32  ;;  %v1197_v42 = vpop.f32.mrb[21].mxu1 }
 0x262   : > { %v1198_v43 = vadd.f32 %v5513_v32, %v1197_v42  ;;  %v4464_v44 = vpop.f32.mrb[22].mxu1  ;;  %v4275_v42 = vld [vmem:[%s5571_s29 + $0x20] sm:$0xff]  }
 0x263   : > { %1230 = vst [vmem:[%s5517_s23 + $0x90] sm:$0xff] %v1206_v41  ;;  %v1209_v45 = vadd.f32 %v4464_v44, %v5513_v32 }
 0x264   : > { %1228 = vst [vmem:[%s5517_s23 + $0x80] sm:$0xff] %v1198_v43  ;;  %v4276_v43 = vld [vmem:[%s5571_s29 + $0x28] sm:$0xff]  }
 0x265   : > { %1231 = vst [vmem:[%s5517_s23 + $0x98] sm:$0xff] %v1209_v45 }
 0x2b2   : > { %v1602_v8 = vpop.xlane.xlu0 %1601 }
 0x2b3   : > { %v1603_v11 = vsub.f32 %v1598_v47, %v1602_v8  ;;  %v1200_v47 = vpop.f32.mrb[23].mxu1 }
 0x2b4   : > { %v1201_v48 = vadd.f32 %v5513_v32, %v1200_v47  ;;  %v1468_v50 = vpop.f32.mrb[24].mxu1 }
 0x2b5   : > { %v1604_v13 = vmul.f32 1.442695, %v1603_v11  ;;  %v4483_v52 = vpop.f32.mrb[25].mxu1  ;;  %v5562_v27 = vadd.f32 %v1488_v51, %v1468_v50 }
 0x2b6   : > { %1229 = vst [vmem:[%s5517_s23 + $0x88] sm:$0xff] %v1201_v48  ;;  %v1471_v53 = vpop.f32.mrb[26].mxu1 }
 0x2b7   : > { %4891 = vpow2.f32 %v1604_v13  ;;  %v4484_v54 = vpop.f32.mrb[27].mxu1  ;;  %4491 = vmatpush3.msk.msra.mxu0 %vm1615_vm5, %v5562_v27 }
 0x2b8   : > { %4495 = vmatprep.subr.mxu0 %v5085_v28 }
 0x2c1   : > { %v4892_v29 = vpop.eup %4891 }
 0x2c2   : > { %v1606_v34 = vsel %vm1599_vm4, %v4892_v29, 0.0 }
 0x2c3   : > { %1607 = vadd.xlane.f32.xlu0 %v1606_v34 }
 0x350   : > { %v1608_v32 = vpop.xlane.xlu0 %1607 }
 0x351   : > { %4893 = vrcp.f32 %v1608_v32 }
 0x35b   : > { %v4894_v57 = vpop.eup %4893 }
 0x35c   : > { %v1610_v60 = vmul.f32 %v4894_v57, %v4892_v29 }
 0x35e   : > { %4493 = vmatmul.mubr.msk.f32.vlgmr.msra.gmra.mrb[22].mxu0 %vm1611_vm6, %v1610_v60 }
 0x35f   : > { %4496 = vmatpush3.xpose.msk.msra.mxu0 %vm679_vm0, %v1692_v58  ;;  %4497 = vmatprep.mubr.msk.f32.mxu0 %vm5086_vm1, %v5085_v28 }
 0x360   : > { %4500 = vmatprep.subr.mxu0 %v5085_v28 }
 0x362   : > { %4498 = vmatmul.mubr.msk.f32.vlgmr.msra.gmra.mrb[24].mxu0 %vm679_vm0, %v1690_v61 }
 0x363   : > { %4502 = vmatprep.mubr.msk.f32.mxu0 %vm5086_vm1, %v5085_v28 }
 0x431   : > { %v1685_v62 = vpop.f32.mrb[22].mxu0 }
 0x432   : > { %v4494_v63 = vpop.f32.mrb[23].mxu0  ;;  %4525 = vmatmul.mubr.msk.f32.vlgmr.msra.gmra.mrb[2].mxu1 %vm679_vm0, %v1685_v62  ;;  %v4857_v62 = vld [vmem:[%s5276_s19 + $0xc4] ss:$12 sps:$4 sm:$0xff]  }
 0x433   : > { %4545 = vmatprep.mubr.msk.f32.mxu1 %vm5086_vm1, %v5085_v28  ;;  %4693 = vmatpush3.bf16.msra.mxu1 %v4275_v42 }
 0x434   : > { %4694 = vmatprep.subr.bf16.mxu1 %v5087_v30 }
 0x435   : > { %v1763_v0 = vpop.f32.mrb[24].mxu0 }
 0x436   : > { %v1767_v1 = vmul.f32 0.17677669, %v1763_v0  ;;  %v4499_v3 = vpop.f32.mrb[25].mxu0 }
 0x437   : > { %4696 = vmatpush3.bf16.msra.mxu1 %v4276_v43  ;;  %v4278_v3 = vld [vmem:[%s5571_s29 + $0x38] sm:$0xff]  }
 0x438   : > { %v1768_v4 = vsel %vm1599_vm4, %v1767_v1, -inf  ;;  %4697 = vmatprep.subr.bf16.mxu1 %v5087_v30 }
 0x439   : > { %1769 = vmax.xlane.f32.xlu0 %v1768_v4 }
 0x44f   : > { %1779 = vrot.lane.b32.xlu0 %v5562_v27, %s5983_s22 }
 0x453   : > { %2004 = vrot.lane.b32.xlu0 %v5424_v59, %s5958_s21 }
 0x457   : > { %2002 = vrot.lane.b32.xlu0 %v5431_v2, %s5958_s21 }
 0x4c6   : > { %v1770_v5 = vpop.xlane.xlu0 %1769 }
 0x4c7   : > { %v1771_v6 = vsub.f32 %v1767_v1, %v1770_v5  ;;  %v4277_v1 = vld [vmem:[%s5571_s29 + $0x30] sm:$0xff]  }
 0x4c9   : > { %v1772_v7 = vmul.f32 1.442695, %v1771_v6  ;;  %v4855_v6 = vld [vmem:[%s5276_s19 + $0xc0] ss:$12 sps:$4 sm:$0xff]  }
 0x4ca   : > { %v1780_v8 = vpop.permute.xlu0 %1779 }
 0x4cb   : > { %4895 = vpow2.f32 %v1772_v7  ;;  %4501 = vmatpush3.msk.msra.mxu0 %vm1615_vm5, %v1780_v8  ;;  %v4860_v8 = vld [vmem:[%s5276_s19 + $0xdc] ss:$12 sps:$4 sm:$0xff]  }
 0x4cc   : > { %4679 = vmatprep.subr.bf16.mxu0 %v5087_v30 }
 0x4d5   : > { %v4896_v9 = vpop.eup %4895 }
 0x4d6   : > { %v1774_v10 = vsel %vm1599_vm4, %v4896_v9, 0.0 }
 0x4d7   : > { %1775 = vadd.xlane.f32.xlu1 %v1774_v10  ;;  %v4863_v10 = vld [vmem:[%s5276_s19 + $0xf4] ss:$12 sps:$4 sm:$0xff]  }
 0x4e8   : > { %2092 = vrot.lane.b32.xlu1 %v5562_v27, %s5958_s21 }
 0x4ec   : > { %2245 = vrot.lane.b32.xlu1 %v5424_v59, %s5090_s26  ;;  %v2005_v59 = vpop.permute.xlu0 %2004 }
 0x4f0   : > { %v2003_v21 = vpop.permute.xlu0 %2002 }
 0x505   : > { %v1998_v11 = vpop.f32.mrb[2].mxu1 }
 0x506   : > { %v4526_v12 = vpop.f32.mrb[3].mxu1 }
 0x507   : > { %v4866_v12 = vld [vmem:[%s5276_s19 + $0x10c] ss:$12 sps:$4 sm:$0xff]  }
 0x564   : > { %v1776_v13 = vpop.xlane.xlu1 %1775 }
 0x565   : > { %4897 = vrcp.f32 %v1776_v13  ;;  %v4864_v13 = vld [vmem:[%s5276_s19 + $0x108] ss:$12 sps:$4 sm:$0xff]  }
 0x568   : > { %v2093_v22 = vpop.permute.xlu1 %2092 }
 0x56c   : > { %v2246_v44 = vpop.permute.xlu1 %2245 }
 0x56f   : > { %v4898_v14 = vpop.eup %4897 }
 0x570   : > { %v1778_v15 = vmul.f32 %v4898_v14, %v4896_v9  ;;  %v4858_v9 = vld [vmem:[%s5276_s19 + $0xd8] ss:$12 sps:$4 sm:$0xff]  }
 0x571   : > { %v4869_v14 = vld [vmem:[%s5276_s19 + $0x124] ss:$12 sps:$4 sm:$0xff]  }
 0x572   : > { %4503 = vmatmul.mubr.msk.f32.vlgmr.msra.gmra.mrb[26].mxu0 %vm1611_vm6, %v1778_v15  ;;  %v4867_v15 = vld [vmem:[%s5276_s19 + $0x120] ss:$12 sps:$4 sm:$0xff]  }
 0x573   : > { %4681 = vmatpush3.bf16.msra.mxu0 %v4273_v16  ;;  %4513 = vmatprep.mubr.msk.f32.mxu0 %vm5086_vm1, %v5085_v28  ;;  %v4870_v16 = vld [vmem:[%s5276_s19 + $0x138] ss:$12 sps:$4 sm:$0xff]  }
 0x574   : > { %4682 = vmatprep.subr.bf16.mxu0 %v5087_v30 }
 0x577   : > { %4684 = vmatpush3.bf16.msra.mxu0 %v4274_v17  ;;  %v4875_v17 = vld [vmem:[%s5276_s19 + $0x154] ss:$12 sps:$4 sm:$0xff]  }
 0x578   : > { %4527 = vmatprep.subr.mxu0 %v5085_v28 }
 0x645   : > { %v1852_v18 = vpop.f32.mrb[26].mxu0 }
 0x646   : > { %v4504_v19 = vpop.f32.mrb[27].mxu0  ;;  %4514 = vmatmul.mubr.msk.f32.vlgmr.msra.gmra.mrb[28].mxu0 %vm679_vm0, %v1852_v18  ;;  %v4878_v18 = vld [vmem:[%s5276_s19 + $0x16c] ss:$12 sps:$4 sm:$0xff]  }
 0x647   : > { %4528 = vmatpush3.xpose.msk.msra.mxu0 %vm679_vm0, %v2005_v59  ;;  %4529 = vmatprep.mubr.msk.f32.mxu0 %vm5086_vm1, %v5085_v28  ;;  %v4873_v59 = vld [vmem:[%s5276_s19 + $0x150] ss:$12 sps:$4 sm:$0xff]   ;;  %v4876_v19 = vld [vmem:[%s5276_s19 + $0x168] ss:$12 sps:$4 sm:$0xff]  }
 0x648   : > { %4532 = vmatprep.subr.mxu0 %v5085_v28 }
 0x64a   : > { %4530 = vmatmul.mubr.msk.f32.vlgmr.msra.gmra.mrb[30].mxu0 %vm679_vm0, %v2003_v21  ;;  %v4093_v21 = vld [vmem:[%s5350_s18 + $0x2] sm:$0x3] }
 0x64b   : > { %4533 = vmatpush3.msk.msra.mxu0 %vm1615_vm5, %v2093_v22  ;;  %4534 = vmatprep.mubr.msk.f32.mxu0 %vm5086_vm1, %v5085_v28  ;;  %v4879_v22 = vld [vmem:[%s5276_s19 + $0xc8] ss:$12 sps:$4 sm:$0xff]  }
 0x64c   : > { %4548 = vmatprep.subr.mxu0 %v5085_v28 }
 0x719   : > { %v1925_v23 = vpop.f32.mrb[28].mxu0 }
 0x71a   : > { %v1999_v24 = vadd.f32 %v1998_v11, %v1925_v23  ;;  %v4515_v25 = vpop.f32.mrb[29].mxu0  ;;  %v4861_v11 = vld [vmem:[%s5276_s19 + $0xf0] ss:$12 sps:$4 sm:$0xff]  }
 0x71b   : > { %v4880_v25 = vld [vmem:[%s5276_s19 + $0xe0] ss:$12 sps:$4 sm:$0xff]  }
 0x71d   : > { %v2076_v29 = vpop.f32.mrb[30].mxu0 }
 0x71e   : > { %v2080_v31 = vmul.f32 0.17677669, %v2076_v29  ;;  %v4531_v33 = vpop.f32.mrb[31].mxu0  ;;  %v4881_v29 = vld [vmem:[%s5276_s19 + $0xf8] ss:$12 sps:$4 sm:$0xff]  }
 0x71f   : > { %v4883_v33 = vld [vmem:[%s5276_s19 + $0x128] ss:$12 sps:$4 sm:$0xff]  }
 0x720   : > { %v2081_v34 = vsel %vm1599_vm4, %v2080_v31, -inf }
 0x721   : > { %2082 = vmax.xlane.f32.xlu0 %v2081_v34  ;;  %v4884_v34 = vld [vmem:[%s5276_s19 + $0x140] ss:$12 sps:$4 sm:$0xff]  }
 0x7ae   : > { %v2083_v35 = vpop.xlane.xlu0 %2082 }
 0x7af   : > { %v2084_v37 = vsub.f32 %v2080_v31, %v2083_v35  ;;  %v4882_v31 = vld [vmem:[%s5276_s19 + $0x110] ss:$12 sps:$4 sm:$0xff]   ;;  %v4885_v35 = vld [vmem:[%s5276_s19 + $0x158] ss:$12 sps:$4 sm:$0xff]  }
 0x7b1   : > { %v2085_v38 = vmul.f32 1.442695, %v2084_v37  ;;  %v4886_v37 = vld [vmem:[%s5276_s19 + $0x170] ss:$12 sps:$4 sm:$0xff]  }
 0x7b3   : > { %4899 = vpow2.f32 %v2085_v38  ;;  %v5689_v38 = vld [vmem:[%s5402_s15 + $0x4] sm:$0xf]  ;;  %s4197_s15 = smul.u32 2560, %s5193_s17 }
 0x7b4   : > { %v2739_v42 = vrot.slane %v5689_v38, %v1477_v46 }
 0x7bd   : > { %v4900_v39 = vpop.eup %4899 }
 0x7be   : > { %v2087_v41 = vsel %vm1599_vm4, %v4900_v39, 0.0 }
 0x7bf   : > { %2088 = vadd.xlane.f32.xlu1 %v2087_v41 }
 0x7d0   : > { %2243 = vrot.lane.b32.xlu1 %v5431_v2, %s5090_s26 }
 0x84c   : > { %v2089_v45 = vpop.xlane.xlu1 %2088 }
 0x84d   : > { %4901 = vrcp.f32 %v2089_v45 }
 0x850   : > { %v2244_v2 = vpop.permute.xlu1 %2243 }
 0x857   : > { %v4902_v47 = vpop.eup %4901 }
 0x858   : > { %v2091_v48 = vmul.f32 %v4902_v47, %v4900_v39  ;;  %v2744_v39 = vrot.slane %v5689_v38, %v1482_v36 }
 0x85a   : > { %4535 = vmatmul.mubr.msk.f32.vlgmr.msra.gmra.mrb[32].mxu0 %vm1611_vm6, %v2091_v48 }
 0x85b   : > { %4549 = vmatpush3.xpose.msk.msra.mxu0 %vm679_vm0, %v2246_v44  ;;  %4550 = vmatprep.mubr.msk.f32.mxu0 %vm5086_vm1, %v5085_v28 }
 0x85c   : > { %4553 = vmatprep.subr.mxu0 %v5085_v28 }
 0x85e   : > { %4551 = vmatmul.mubr.msk.f32.vlgmr.msra.gmra.mrb[34].mxu0 %vm679_vm0, %v2244_v2  ;;  %v2486_v2 = vsub.s32 3, %v5395_v20 }
 0x85f   : > { %4555 = vmatprep.mubr.msk.f32.mxu0 %vm5086_vm1, %v5085_v28 }
 0x92d   : > { %v2165_v50 = vpop.f32.mrb[32].mxu0 }
 0x92e   : > { %v4536_v51 = vpop.f32.mrb[33].mxu0  ;;  %4546 = vmatmul.mubr.msk.f32.vlgmr.msra.gmra.mrb[28].mxu1 %vm679_vm0, %v2165_v50  ;;  %v2487_v50 = vrot.slane %v5409_v40, %v2486_v2 }
 0x92f   : > { %4566 = vmatprep.mubr.msk.f32.mxu1 %vm5086_vm1, %v5085_v28  ;;  %4699 = vmatpush3.bf16.msra.mxu1 %v4277_v1 }
 0x930   : > { %4700 = vmatprep.subr.bf16.mxu1 %v5087_v30 }
 0x931   : > { %v2317_v52 = vpop.f32.mrb[34].mxu0 }
 0x932   : > { %v2321_v53 = vmul.f32 0.17677669, %v2317_v52  ;;  %v4552_v54 = vpop.f32.mrb[35].mxu0 }
 0x933   : > { %4702 = vmatpush3.bf16.msra.mxu1 %v4278_v3 }
 0x934   : > { %v2322_v55 = vsel %vm1599_vm4, %v2321_v53, -inf  ;;  %4569 = vmatprep.subr.bf16.mxu1 %v5085_v28 }
 0x935   : > { %2323 = vmax.xlane.f32.xlu0 %v2322_v55  ;;  %v2749_v55 = vrot.slane %v5689_v38, %v1487_v49 }
 0x94b   : > { %2333 = vrot.lane.b32.xlu0 %v5562_v27, %s5090_s26 }
 0x9c2   : > { %v2324_v56 = vpop.xlane.xlu0 %2323 }
 0x9c3   : > { %v2325_v32 = vsub.f32 %v2321_v53, %v2324_v56 }
 0x9c5   : > { %v2326_v57 = vmul.f32 1.442695, %v2325_v32 }
 0x9c6   : > { %v2334_v58 = vpop.permute.xlu0 %2333 }
 0x9c7   : > { %4903 = vpow2.f32 %v2326_v57  ;;  %4554 = vmatpush3.msk.msra.mxu0 %vm1615_vm5, %v2334_v58 }
 0x9c8   : > { %2653 = vmatprep.subr.bf16.mxu0 %v4857_v62 }
 0x9d1   : > { %v4904_v60 = vpop.eup %4903 }
 0x9d2   : > { %v2328_v61 = vsel %vm1599_vm4, %v4904_v60, 0.0 }
 0x9d3   : > { %2329 = vadd.xlane.f32.xlu1 %v2328_v61 }
 0xa01   : > { %v2238_v63 = vpop.f32.mrb[28].mxu1 }
 0xa02   : > { %v5644_v0 = vadd.f32 %v2238_v63, %v1999_v24  ;;  %v4547_v27 = vpop.f32.mrb[29].mxu1 }
 0xa60   : > { %v2330_v4 = vpop.xlane.xlu1 %2329 }
 0xa61   : > { %4905 = vrcp.f32 %v2330_v4 }
 0xa6b   : > { %v4906_v5 = vpop.eup %4905 }
 0xa6c   : > { %v2332_v7 = vmul.f32 %v4906_v5, %v4904_v60 }
 0xa6e   : > { %4556 = vmatmul.mubr.msk.f32.vlgmr.msra.gmra.mrb[36].mxu0 %vm1611_vm6, %v2332_v7 }
 0xa6f   : > { %2654 = vmatpush1.bf16.msra.mxu0 %v4855_v6  ;;  %2685 = vmatprep.mubr.bf16.mxu0 %v5084_v26  ;;  %v4872_v26 = vld [vmem:[%s5276_s19 + $0x13c] ss:$12 sps:$4 sm:$0xff]   ;;  %s3993_s19 = sshll.u32 %s5272_s27, 3 }
 0xa70   : > { %2655 = vmatprep.subr.bf16.mxu0 %v4860_v8  ;;  %s5727_s18 = scalar_lea.vmem [#allocation8], %s3993_s19  ;;  %s5091_s19 = smov [#allocation6]  }
 0xa73   : > { %2656 = vmatpush1.bf16.msra.mxu0 %v4858_v9 }
 0xa74   : > { %2657 = vmatprep.subr.bf16.mxu0 %v4863_v10 }
 0xa77   : > { %2658 = vmatpush1.bf16.msra.mxu0 %v4861_v11 }
 0xa78   : > { %2659 = vmatprep.subr.bf16.mxu0 %v4866_v12 }
 0xa7b   : > { %2660 = vmatpush1.bf16.msra.mxu0 %v4864_v13 }
 0xa7c   : > { %2661 = vmatprep.subr.bf16.mxu0 %v4869_v14 }
 0xa7f   : > { %2662 = vmatpush1.bf16.msra.mxu0 %v4867_v15 }
 0xa80   : > { %2663 = vmatprep.subr.bf16.mxu0 %v4872_v26  ;;  %v4281_v26 = vld [vmem:[%s5571_s29 + $0x50] sm:$0xff]  }
 0xa83   : > { %2664 = vmatpush1.bf16.msra.mxu0 %v4870_v16  ;;  %v4282_v16 = vld [vmem:[%s5571_s29 + $0x58] sm:$0xff]  }
 0xa84   : > { %2665 = vmatprep.subr.bf16.mxu0 %v4875_v17 }
 0xa87   : > { %2666 = vmatpush1.bf16.msra.mxu0 %v4873_v59 }
 0xa88   : > { %2667 = vmatprep.subr.bf16.mxu0 %v4878_v18 }
 0xa8b   : > { %2668 = vmatpush1.bf16.msra.mxu0 %v4876_v19 }
 0xa8c   : > { %4589 = vmatprep.subr.mxu0 %v5085_v28 }
 0xa8e   : > { %2686 = vmatmul.mubr.bf16.vlgmr.msra.gmra.mrb[40].mxu0 %v4093_v21 }
 0xa8f   : > { %4591 = vmatprep.mubr.msk.f32.mxu0 %vm5086_vm1, %v5085_v28 }
 0xb41   : > { %v2406_v23 = vpop.f32.mrb[36].mxu0 }
 0xb42   : > { %v4557_v24 = vpop.f32.mrb[37].mxu0  ;;  %4567 = vmatmul.mubr.msk.f32.vlgmr.msra.gmra.mrb[30].mxu1 %vm679_vm0, %v2406_v23 }
 0xb43   : > { %4570 = vmatpush3.bf16.msra.mxu1 %v4879_v22  ;;  %4585 = vmatprep.mubr.msk.bf16.mxu1 %vm5086_vm1, %v5085_v28  ;;  %v4280_v22 = vld [vmem:[%s5571_s29 + $0x48] sm:$0xff]  }
 0xb44   : > { %4571 = vmatprep.subr.bf16.mxu1 %v5085_v28 }
 0xb47   : > { %4572 = vmatpush3.bf16.msra.mxu1 %v4880_v25 }
 0xb48   : > { %4573 = vmatprep.subr.bf16.mxu1 %v5085_v28 }
 0xb4b   : > { %4574 = vmatpush3.bf16.msra.mxu1 %v4881_v29 }
 0xb4c   : > { %4575 = vmatprep.subr.bf16.mxu1 %v5085_v28 }
 0xb4f   : > { %4576 = vmatpush3.bf16.msra.mxu1 %v4882_v31 }
 0xb50   : > { %4577 = vmatprep.subr.bf16.mxu1 %v5085_v28 }
 0xb53   : > { %4578 = vmatpush3.bf16.msra.mxu1 %v4883_v33 }
 0xb54   : > { %4579 = vmatprep.subr.bf16.mxu1 %v5085_v28 }
 0xb57   : > { %4580 = vmatpush3.bf16.msra.mxu1 %v4884_v34 }
 0xb58   : > { %4581 = vmatprep.subr.bf16.mxu1 %v5085_v28 }
 0xb5b   : > { %4582 = vmatpush3.bf16.msra.mxu1 %v4885_v35 }
 0xb5c   : > { %4583 = vmatprep.subr.bf16.mxu1 %v5085_v28 }
 0xb5f   : > { %4584 = vmatpush3.bf16.msra.mxu1 %v4886_v37 }
 0xb60   : > { %4599 = vmatprep.subr.mxu1 %v5085_v28 }
 0xb61   : > { %v2687_v41 = vpop.f32.mrb[40].mxu0 }
 0xb62   : > { %v2689_v43 = vpop.f32.mrb[41].mxu0  ;;  %4586 = vmatmul.mubr.bf16.vlgmr.msra.gmra.mrb[32].mxu1 %v4093_v21  ;;  %v5707_v36 = vadd.f32 %v2739_v42, %v2687_v41  ;;  %v4279_v21 = vld [vmem:[%s5571_s29 + $0x40] sm:$0xff]  }
 0xb63   : > { %v5699_v44 = vadd.f32 %v2744_v39, %v2689_v43  ;;  %v2691_v45 = vpop.f32.mrb[42].mxu0  ;;  %4601 = vmatprep.mubr.msk.f32.mxu1 %vm5086_vm1, %v5085_v28 }
 0xb64   : > { %v2692_v47 = vpop.f32.mrb[43].mxu0 }
 0xb65   : > { %2950 = vrot.lane.b32.xlu0 %v5699_v44, %s5983_s22  ;;  %4590 = vmatpush3.xpose.msk.msra.mxu0 %vm679_vm0, %v5699_v44 }
 0xb66   : > { %4594 = vmatprep.subr.mxu0 %v5085_v28 }
 0xb68   : > { %4592 = vmatmul.mubr.msk.f32.vlgmr.msra.gmra.mrb[38].mxu0 %vm679_vm0, %v5707_v36 }
 0xb69   : > { %2948 = vrot.lane.b32.xlu0 %v5707_v36, %s5983_s22  ;;  %4596 = vmatprep.mubr.msk.f32.mxu0 %vm5086_vm1, %v5085_v28 }
 0xbd7   : > { %v2951_v46 = vpop.permute.xlu0 %2950 }
 0xbd8   : > { %4600 = vmatpush3.xpose.msk.msra.mxu1 %vm679_vm0, %v2951_v46 }
 0xbd9   : > { %4703 = vmatprep.subr.bf16.mxu1 %v5087_v30 }
 0xbdb   : > { %v2949_v48 = vpop.permute.xlu0 %2948 }
 0xbdc   : > { %4602 = vmatmul.mubr.msk.f32.vlgmr.msra.gmra.mrb[36].mxu1 %vm679_vm0, %v2949_v48 }
 0xbdd   : > { %4617 = vmatprep.mubr.msk.f32.mxu1 %vm5086_vm1, %v5085_v28  ;;  %4705 = vmatpush3.bf16.msra.mxu1 %v4281_v26 }
 0xbde   : > { %4706 = vmatprep.subr.bf16.mxu1 %v5087_v30 }
 0xbe1   : > { %4708 = vmatpush3.bf16.msra.mxu1 %v4282_v16 }
 0xbe2   : > { %4631 = vmatprep.subr.mxu1 %v5085_v28 }
 0xc15   : > { %v2479_v51 = vpop.f32.mrb[30].mxu1 }
 0xc16   : > { %v2483_v52 = vadd.f32 %v2479_v51, %v5644_v0  ;;  %v4568_v53 = vpop.f32.mrb[31].mxu1 }
 0xc18   : > { %v2488_v54 = vadd.f32 %v2487_v50, %v2483_v52 }
 0xc1a   : > { %2489 = vst [vmem:[%s5727_s18] sm:$0xf] %v2488_v54  ;;  %v4283_v54 = vld [vmem:[%s5571_s29 + $0x60] sm:$0xff]  }
 0xc35   : > { %v2728_v56 = vpop.f32.mrb[32].mxu1 }
 0xc36   : > { %v5733_v32 = vadd.f32 %v2749_v55, %v2728_v56  ;;  %v4587_v57 = vpop.f32.mrb[33].mxu1 }
 0xc37   : > { %v2731_v58 = vpop.f32.mrb[34].mxu1 }
 0xc38   : > { %v4588_v60 = vpop.f32.mrb[35].mxu1  ;;  %4595 = vmatpush3.msk.msra.mxu0 %vm1615_vm5, %v5733_v32 }
 0xc39   : > { %4604 = vmatprep.subr.mxu0 %v5085_v28 }
 0xc3b   : > { %v2856_v40 = vpop.f32.mrb[38].mxu0 }
 0xc3c   : > { %v2860_v61 = vmul.f32 0.17677669, %v2856_v40  ;;  %v4593_v62 = vpop.f32.mrb[39].mxu0 }
 0xc3e   : > { %v2861_v63 = vsel %vm1599_vm4, %v2860_v61, -inf }
 0xc3f   : > { %2862 = vmax.xlane.f32.xlu0 %v2861_v63 }
 0xc55   : > { %3263 = vrot.lane.b32.xlu0 %v5699_v44, %s5958_s21 }
 0xcaf   : > { %v3022_v49 = vpop.f32.mrb[36].mxu1 }
 0xcb0   : > { %v3026_v0 = vmul.f32 0.17677669, %v3022_v49  ;;  %v4603_v27 = vpop.f32.mrb[37].mxu1 }
 0xcb2   : > { %v3027_v1 = vsel %vm1599_vm4, %v3026_v0, -inf }
 0xcb3   : > { %3028 = vmax.xlane.f32.xlu1 %v3027_v1 }
 0xccc   : > { %v2863_v3 = vpop.xlane.xlu0 %2862 }
 0xccd   : > { %v2864_v4 = vsub.f32 %v2860_v61, %v2863_v3 }
 0xccf   : > { %v2865_v5 = vmul.f32 1.442695, %v2864_v4 }
 0xcd0   : > { %v3264_v29 = vpop.permute.xlu0 %3263 }
 0xcd1   : > { %4907 = vpow2.f32 %v2865_v5  ;;  %v4285_v5 = vld [vmem:[%s5571_s29 + $0x70] sm:$0xff]  }
 0xcdb   : > { %v4908_v6 = vpop.eup %4907 }
 0xcdc   : > { %v2867_v7 = vsel %vm1599_vm4, %v4908_v6, 0.0 }
 0xcdd   : > { %2868 = vadd.xlane.f32.xlu1 %v2867_v7 }
 0xd40   : > { %v3029_v8 = vpop.xlane.xlu1 %3028 }
 0xd41   : > { %v3030_v9 = vsub.f32 %v3026_v0, %v3029_v8 }
 0xd43   : > { %v3031_v10 = vmul.f32 1.442695, %v3030_v9 }
 0xd45   : > { %4909 = vpow2.f32 %v3031_v10 }
 0xd4f   : > { %v4910_v11 = vpop.eup %4909 }
 0xd50   : > { %v3033_v12 = vsel %vm1599_vm4, %v4910_v11, 0.0 }
 0xd51   : > { %3034 = vadd.xlane.f32.xlu1 %v3033_v12 }
 0xd62   : > { %3038 = vrot.lane.b32.xlu1 %v5733_v32, %s5983_s22  ;;  %s5825_s22 = scalar_lea.sflag [#allocation7], %s3755_s28 }
 0xd66   : > { %3261 = vrot.lane.b32.xlu1 %v5707_v36, %s5958_s21 }
 0xd6a   : > { %v2869_v13 = vpop.xlane.xlu1 %2868 }
 0xd6b   : > { %4911 = vrcp.f32 %v2869_v13 }
 0xd75   : > { %v4912_v14 = vpop.eup %4911 }
 0xd76   : > { %v2871_v15 = vmul.f32 %v4912_v14, %v4908_v6  ;;  %v4286_v6 = vld [vmem:[%s5571_s29 + $0x78] sm:$0xff]  }
 0xd78   : > { %4597 = vmatmul.mubr.msk.f32.vlgmr.msra.gmra.mrb[44].mxu0 %vm1611_vm6, %v2871_v15 }
 0xd79   : > { %4606 = vmatprep.mubr.msk.f32.mxu0 %vm5086_vm1, %v5085_v28 }
 0xdde   : > { %v3035_v17 = vpop.xlane.xlu1 %3034 }
 0xddf   : > { %4913 = vrcp.f32 %v3035_v17 }
 0xde2   : > { %v3039_v59 = vpop.permute.xlu1 %3038 }
 0xde3   : > { %4605 = vmatpush3.msk.msra.mxu0 %vm1615_vm5, %v3039_v59 }
 0xde4   : > { %4709 = vmatprep.subr.bf16.mxu0 %v5087_v30 }
 0xde6   : > { %v3262_v33 = vpop.permute.xlu1 %3261 }
 0xde9   : > { %v4914_v18 = vpop.eup %4913 }
 0xdea   : > { %v3037_v19 = vmul.f32 %v4914_v18, %v4910_v11 }
 0xdec   : > { %4607 = vmatmul.mubr.msk.f32.vlgmr.msra.gmra.mrb[46].mxu0 %vm1611_vm6, %v3037_v19 }
 0xded   : > { %4711 = vmatpush3.bf16.msra.mxu0 %v4279_v21  ;;  %4628 = vmatprep.mubr.msk.f32.mxu0 %vm5086_vm1, %v5085_v28 }
 0xdee   : > { %4712 = vmatprep.subr.bf16.mxu0 %v5087_v30 }
 0xdf1   : > { %4714 = vmatpush3.bf16.msra.mxu0 %v4280_v22 }
 0xdf2   : > { %4636 = vmatprep.subr.mxu0 %v5085_v28 }
 0xe4b   : > { %v2944_v23 = vpop.f32.mrb[44].mxu0 }
 0xe4c   : > { %v4598_v24 = vpop.f32.mrb[45].mxu0  ;;  %4629 = vmatmul.mubr.msk.f32.vlgmr.msra.gmra.mrb[48].mxu0 %vm679_vm0, %v2944_v23 }
 0xe4d   : > { %4638 = vmatprep.mubr.msk.f32.mxu0 %vm5086_vm1, %v5085_v28 }
 0xebf   : > { %v3111_v25 = vpop.f32.mrb[46].mxu0 }
 0xec0   : > { %v4608_v31 = vpop.f32.mrb[47].mxu0  ;;  %4618 = vmatmul.mubr.msk.f32.vlgmr.msra.gmra.mrb[38].mxu1 %vm679_vm0, %v3111_v25 }
 0xec1   : > { %4632 = vmatpush3.xpose.msk.msra.mxu1 %vm679_vm0, %v3264_v29  ;;  %4633 = vmatprep.mubr.msk.f32.mxu1 %vm5086_vm1, %v5085_v28 }
 0xec2   : > { %4715 = vmatprep.subr.bf16.mxu1 %v5087_v30 }
 0xec4   : > { %4634 = vmatmul.mubr.msk.f32.vlgmr.msra.gmra.mrb[40].mxu1 %vm679_vm0, %v3262_v33 }
 0xec5   : > { %4649 = vmatprep.mubr.msk.f32.mxu1 %vm5086_vm1, %v5085_v28  ;;  %4717 = vmatpush3.bf16.msra.mxu1 %v4283_v54 }
 0xec6   : > { %4718 = vmatprep.subr.bf16.mxu1 %v5087_v30 }
 0xf1f   : > { %v3257_v34 = vpop.f32.mrb[48].mxu0 }
 0xf20   : > { %v4630_v35 = vpop.f32.mrb[49].mxu0 }
 0xf93   : > { %v3184_v37 = vpop.f32.mrb[38].mxu1 }
 0xf94   : > { %v5775_v39 = vadd.f32 %v3257_v34, %v3184_v37  ;;  %v4619_v41 = vpop.f32.mrb[39].mxu1 }
 0xf97   : > { %v3335_v42 = vpop.f32.mrb[40].mxu1 }
 0xf98   : > { %v3339_v43 = vmul.f32 0.17677669, %v3335_v42  ;;  %v4635_v45 = vpop.f32.mrb[41].mxu1 }
 0xf9a   : > { %v3340_v47 = vsel %vm1599_vm4, %v3339_v43, -inf }
 0xf9b   : > { %3341 = vmax.xlane.f32.xlu1 %v3340_v47 }
 0xfac   : > { %3351 = vrot.lane.b32.xlu1 %v5733_v32, %s5958_s21  ;;  %s4957_s21 = sshll.u32 %s5091_s19, 4  ;;  %s4958_s21 = int_to_ptr.vmem [resolvable:$false] %s4957_s21 }
 0xfad   : > { %s4959_s23 = scalar_lea.vmem %s4958_s21, 5120  ;;  %p4960_p0 = scmp.lt.s32.totalorder %s5823_s12, %s4958_s21 }
 0xfb0   : > { %3502 = vrot.lane.b32.xlu1 %v5707_v36, %s5090_s26  ;;  %v4284_v36 = vld [vmem:[%s5571_s29 + $0x68] sm:$0xff]   ;;  %s5821_s29 = scalar_lea.hbm %s5945_s13, %s4197_s15 }
 0xfb1   : > { %4720 = vmatpush3.bf16.msra.mxu1 %v4284_v36 }
 0xfb2   : > { %4721 = vmatprep.subr.bf16.mxu1 %v5087_v30 }
0x1028   : > { %v3342_v46 = vpop.xlane.xlu1 %3341 }
0x1029   : > { %v3343_v48 = vsub.f32 %v3339_v43, %v3342_v46 }
0x102b   : > { %v3344_v50 = vmul.f32 1.442695, %v3343_v48 }
0x102c   : > { %v3352_v51 = vpop.permute.xlu1 %3351 }
0x102d   : > { %4915 = vpow2.f32 %v3344_v50  ;;  %4637 = vmatpush3.msk.msra.mxu0 %vm1615_vm5, %v3352_v51 }
0x102e   : > { %4652 = vmatprep.subr.mxu0 %v5085_v28 }
0x1037   : > { %v4916_v52 = vpop.eup %4915 }
0x1038   : > { %v3346_v53 = vsel %vm1599_vm4, %v4916_v52, 0.0 }
0x1039   : > { %3347 = vadd.xlane.f32.xlu0 %v3346_v53 }
0x104f   : > { %3504 = vrot.lane.b32.xlu0 %v5699_v44, %s5090_s26  ;;  %v3503_v44 = vpop.permute.xlu1 %3502 }
0x10c6   : > { %v3348_v55 = vpop.xlane.xlu0 %3347 }
0x10c7   : > { %4917 = vrcp.f32 %v3348_v55 }
0x10ca   : > { %v3505_v58 = vpop.permute.xlu0 %3504 }
0x10d1   : > { %v4918_v56 = vpop.eup %4917 }
0x10d2   : > { %v3350_v57 = vmul.f32 %v4918_v56, %v4916_v52 }
0x10d4   : > { %4639 = vmatmul.mubr.msk.f32.vlgmr.msra.gmra.mrb[50].mxu0 %vm1611_vm6, %v3350_v57 }
0x10d5   : > { %4653 = vmatpush3.xpose.msk.msra.mxu0 %vm679_vm0, %v3505_v58  ;;  %4654 = vmatprep.mubr.msk.f32.mxu0 %vm5086_vm1, %v5085_v28 }
0x10d6   : > { %4657 = vmatprep.subr.mxu0 %v5085_v28 }
0x10d8   : > { %4655 = vmatmul.mubr.msk.f32.vlgmr.msra.gmra.mrb[52].mxu0 %vm679_vm0, %v3503_v44 }
0x10d9   : > { %4659 = vmatprep.mubr.msk.f32.mxu0 %vm5086_vm1, %v5085_v28 }
0x11a7   : > { %v3424_v60 = vpop.f32.mrb[50].mxu0 }
0x11a8   : > { %v4640_v40 = vpop.f32.mrb[51].mxu0  ;;  %4650 = vmatmul.mubr.msk.f32.vlgmr.msra.gmra.mrb[42].mxu1 %vm679_vm0, %v3424_v60 }
0x11a9   : > { %4670 = vmatprep.mubr.msk.f32.mxu1 %vm5086_vm1, %v5085_v28  ;;  %4723 = vmatpush3.bf16.msra.mxu1 %v4285_v5 }
0x11aa   : > { %4724 = vmatprep.subr.bf16.mxu1 %v5087_v30 }
0x11ab   : > { %v3576_v61 = vpop.f32.mrb[52].mxu0 }
0x11ac   : > { %v3580_v62 = vmul.f32 0.17677669, %v3576_v61  ;;  %v4656_v63 = vpop.f32.mrb[53].mxu0 }
0x11ad   : > { %4726 = vmatpush3.bf16.msra.mxu1 %v4286_v6 }
0x11ae   : > { %v3581_v49 = vsel %vm1599_vm4, %v3580_v62, -inf }
0x11af   : > { %3582 = vmax.xlane.f32.xlu1 %v3581_v49 }
0x11c0   : > { %3592 = vrot.lane.b32.xlu1 %v5733_v32, %s5090_s26  ;;  %s4953_s26 = scalar_lea.vmem %s5823_s12, 2560 }
0x11c1   : > { %p4954_p12 = scmp.ne.s32.totalorder %s5823_s12, %s4953_s26  ;;  %p4961_p2 = scmp.lt.s32.totalorder %s4959_s23, %s4953_s26 }
0x11c3   : > { %p4955_p8 = pnand %p4954_p12, %p5984_p13  ;;  %p4962_p4 = por %p4961_p2, %p4960_p0 }
0x11c5   : > { %p4956_p10 = pneg %p4955_p8 }
0x11c7   : > { %p4963_p5 = pnand %p4962_p4, %p4956_p10 }
0x123c   : > { %v3583_v0 = vpop.xlane.xlu1 %3582 }
0x123d   : > { %v3584_v27 = vsub.f32 %v3580_v62, %v3583_v0 }
0x123f   : > { %v3585_v1 = vmul.f32 1.442695, %v3584_v27 }
0x1240   : > { %v3593_v3 = vpop.permute.xlu1 %3592 }
0x1241   : > { %4919 = vpow2.f32 %v3585_v1  ;;  %4658 = vmatpush3.msk.msra.mxu0 %vm1615_vm5, %v3593_v3 }
0x124b   : > { %v4920_v4 = vpop.eup %4919 }
0x124c   : > { %v3587_v28 = vsel %vm1599_vm4, %v4920_v4, 0.0 }
0x124d   : > { %3588 = vadd.xlane.f32.xlu0 %v3587_v28 }
0x127b   : > { %v3497_v32 = vpop.f32.mrb[42].mxu1 }
0x127c   : > { %v5811_v7 = vadd.f32 %v3497_v32, %v5775_v39  ;;  %v4651_v8 = vpop.f32.mrb[43].mxu1 }
0x12da   : > { %v3589_v9 = vpop.xlane.xlu0 %3588 }
0x12db   : > { %4921 = vrcp.f32 %v3589_v9 }
0x12e5   : > { %v4922_v10 = vpop.eup %4921 }
0x12e6   : > { %v3591_v11 = vmul.f32 %v4922_v10, %v4920_v4 }
0x12e8   : > { %4660 = vmatmul.mubr.msk.f32.vlgmr.msra.gmra.mrb[54].mxu0 %vm1611_vm6, %v3591_v11 }
0x13bb   : > { %v3665_v12 = vpop.f32.mrb[54].mxu0 }
0x13bc   : > { %v4661_v13 = vpop.f32.mrb[55].mxu0  ;;  %4671 = vmatmul.mubr.msk.f32.vlgmr.msra.gmra.mrb[44].mxu1 %vm679_vm0, %v3665_v12 }
0x13bd   : > { %4966 = shalt.err (!%p4963_p5)
}
0x13be   : > { %s4967_s15 = scalar_lea.hbm %s5821_s29, 2560  ;;  %s4971_s14 = scalar_lea.hbm %s5945_s13, 5120 }
0x13bf   : > { %p4968_p7 = scmp.ne.s32.totalorder %s5821_s29, %s4967_s15  ;;  %p4972_p3 = scmp.lt.u32.totalorder %s5821_s29, %s5945_s13 }
0x13c0   : > { %p4973_p6 = scmp.lt.u32.totalorder %s4971_s14, %s4967_s15  ;;  %p4975_p12 = scmp.lt.u32.totalorder %s4967_s15, %s5821_s29 }
0x13c1   : > { %p4969_p9 = pnand %p4968_p7, %p5984_p13 }
0x13c2   : > { %p4974_p11 = por %p4973_p6, %p4972_p3 }
0x13c3   : > { %p4970_p1 = pneg %p4969_p9 }
0x13c4   : > { %p4976_p8 = por %p4975_p12, %p4974_p11 }
0x13c6   : > { %p4977_p10 = pnand %p4976_p8, %p4970_p1 }
0x13c8   : > { %4980 = shalt.err (!%p4977_p10)
}
0x13c9   : > { %s5092_s26 = smov 128   ;;  %s5093_s23 = smov 8  }
0x13ca   : > { %4734 = dma.vmem_to_hbm [thread:$0]  (%p5984_p13), %s5823_s12, 2560, %s5821_s29, %s5825_s22, %s5092_s26, %s5092_s26, %s5093_s23  }
0x13cb   : > { %s4190_s28 = sshll.u32 %s5193_s17, 5  ;;  %s3774_s25 = sshll.u32 %s5506_s20, 4  ;;  %s3775_s25 = int_to_ptr.vmem [resolvable:$true] %s3774_s25 }
0x13cc   : > { %s5985_s15 = sld [smem:[#allocation23_spill]]  ;;  %s3751_s1 = scalar_lea.sflag [#allocation4], %s5272_s27 }
0x13cd   : > { %s4981_s2 = scalar_lea.vmem %s3775_s25, 32  ;;  %s5094_s3 = smov [#allocation5]  }
0x13ce   : > { %p4982_p0 = scmp.ne.s32.totalorder %s3775_s25, %s4981_s2  ;;  %s4985_s4 = sshll.u32 %s5094_s3, 4  ;;  %s4986_s4 = int_to_ptr.vmem [resolvable:$false] %s4985_s4 }
0x13cf   : > { %s4987_s5 = scalar_lea.vmem %s4986_s4, 64  ;;  %p4988_p5 = scmp.lt.s32.totalorder %s3775_s25, %s4986_s4 }
0x13d0   : > { %p4983_p2 = pnand %p4982_p0, %p5984_p13  ;;  %p4989_p7 = scmp.lt.s32.totalorder %s4987_s5, %s4981_s2 }
0x13d2   : > { %s5986_s21 = smov %s5985_s15  ;;  %s5854_s0 = scalar_lea.hbm %s5985_s15, %s4190_s28 }
0x13d3   : > { %p4984_p4 = pneg %p4983_p2  ;;  %p4990_p9 = por %p4989_p7, %p4988_p5 }
0x13d5   : > { %p4991_p1 = pnand %p4990_p9, %p4984_p4 }
0x13d7   : > { %4994 = shalt.err (!%p4991_p1)
}
0x13d8   : > { %s4995_s27 = scalar_lea.hbm %s5854_s0, 32  ;;  %s4999_s3 = scalar_lea.hbm %s5986_s21, 64 }
0x13d9   : > { %p4996_p3 = scmp.ne.s32.totalorder %s5854_s0, %s4995_s27  ;;  %p5000_p12 = scmp.lt.u32.totalorder %s5854_s0, %s5986_s21 }
0x13da   : > { %p5001_p8 = scmp.lt.u32.totalorder %s4999_s3, %s4995_s27  ;;  %p5003_p0 = scmp.lt.u32.totalorder %s4995_s27, %s5854_s0 }
0x13db   : > { %p4997_p6 = pnand %p4996_p3, %p5984_p13 }
0x13dc   : > { %p5002_p10 = por %p5001_p8, %p5000_p12 }
0x13dd   : > { %p4998_p11 = pneg %p4997_p6 }
0x13de   : > { %p5004_p2 = por %p5003_p0, %p5002_p10 }
0x13e0   : > { %p5005_p4 = pnand %p5004_p2, %p4998_p11 }
0x13e2   : > { %5008 = shalt.err (!%p5005_p4)
}
0x13e3   : > { %4733 = dma.vmem_to_hbm [thread:$0]  (%p5984_p13), %s3775_s25, 32, %s5854_s0, %s3751_s1   ;;  %v3746_v30 = vrot.slane %v5689_v38, %v2486_v2 }
0x13e4   : > { %s3803_s2 = sshll.u32 %s5727_s18, 4  ;;  %s4198_s5 = sshll.u32 %s5193_s17, 7  ;;  %s5880_s2 = int_to_ptr.vmem [resolvable:$true] %s3803_s2 }
0x13e5   : > { %s5987_s28 = sld [smem:[#allocation24_spill]]  ;;  %s5009_s1 = scalar_lea.vmem %s5880_s2, 128 }
0x13e6   : > { %p5010_p5 = scmp.ne.s32.totalorder %s5880_s2, %s5009_s1  ;;  %s5095_s17 = smov [#allocation8]  }
0x13e7   : > { %s5013_s25 = sshll.u32 %s5095_s17, 4  ;;  %s5014_s25 = int_to_ptr.vmem [resolvable:$false] %s5013_s25 }
0x13e8   : > { %p5011_p7 = pnand %p5010_p5, %p5984_p13  ;;  %s5015_s14 = scalar_lea.vmem %s5014_s25, 256 }
0x13e9   : > { %p5016_p1 = scmp.lt.s32.totalorder %s5880_s2, %s5014_s25  ;;  %p5017_p3 = scmp.lt.s32.totalorder %s5015_s14, %s5009_s1 }
0x13ea   : > { %p5012_p9 = pneg %p5011_p7 }
0x13eb   : > { %s5885_s0 = scalar_lea.hbm %s5987_s28, %s4198_s5  ;;  %p5018_p6 = por %p5017_p3, %p5016_p1 }
0x13ed   : > { %p5019_p11 = pnand %p5018_p6, %p5012_p9 }
0x148f   : > { %v3738_v14 = vpop.f32.mrb[44].mxu1 }
0x1490   : > { %v3742_v15 = vadd.f32 %v3738_v14, %v5811_v7  ;;  %v4672_v26 = vpop.f32.mrb[45].mxu1 }
0x1492   : > { %v3747_v16 = vadd.f32 %v3746_v30, %v3742_v15 }
0x1494   : > { %4187 = vst [vmem:[%s5727_s18 + $0x4] sm:$0xf] %v3747_v16 }
0x1495   : > { %5022 = shalt.err (!%p5019_p11)
}
0x1496   : > { %s5023_s18 = scalar_lea.hbm %s5885_s0, 128  ;;  %s5027_s27 = scalar_lea.hbm %s5987_s28, 256 }
0x1497   : > { %p5024_p12 = scmp.ne.s32.totalorder %s5885_s0, %s5023_s18  ;;  %p5028_p0 = scmp.lt.u32.totalorder %s5885_s0, %s5987_s28 }
0x1498   : > { %p5029_p2 = scmp.lt.u32.totalorder %s5027_s27, %s5023_s18  ;;  %p5031_p5 = scmp.lt.u32.totalorder %s5023_s18, %s5885_s0 }
0x1499   : > { %p5025_p8 = pnand %p5024_p12, %p5984_p13 }
0x149a   : > { %p5030_p4 = por %p5029_p2, %p5028_p0 }
0x149b   : > { %p5026_p10 = pneg %p5025_p8 }
0x149c   : > { %p5032_p7 = por %p5031_p5, %p5030_p4 }
0x149e   : > { %p5033_p9 = pnand %p5032_p7, %p5026_p10 }
0x14a0   : > { %5036 = shalt.err (!%p5033_p9)
}
0x14a1   : > { %s5096_s3 = smov 4   ;;  %s5988_s29 = smov 64  }
0x14a2   : > { %4735 = dma.vmem_to_hbm [thread:$0]  (%p5984_p13), %s5880_s2, 128, %s5885_s0, %s5825_s22, %s5988_s29, %s5988_s29, %s5096_s3  }
0x14a3 PF: > { %s5989_s4 = sld [smem:[#allocation12_spill]]  ;;  %s5990_s5 = sld [smem:[#allocation16_spill]] }
0x14a4   : > { %p5992_p3 = scmp.ge.s32.totalorder %s5079_s16, 2 }
0x14a9   : > { %s3818_s26 = sand.u32 1, %s5989_s4   ;;  %p5991_p1 = scmp.ne.s32.totalorder %s5990_s5, 0 }
0x14aa   : > { %s3819_s23 = scalar_lea.sflag [#allocation4], %s3818_s26 }
0x14ab   : > { %p4744_p6 = pnand %p5992_p3, %p5991_p1 }
0x14ad   : > { %5058 = dma.done.wait (!%p4744_p6), %s3819_s23, 32  }
0x14ae   : > { %5060 = vsyncadd (!%p4744_p6), %s3819_s23, 4294967264  ;;  %s5993_s1 = sadd.s32 4294967294, %s5079_s16  }
0x14af   : > { %s3827_s24 = sand.u32 1, %s5993_s1  }
0x14b0   : > { %s3828_s17 = scalar_lea.sflag [#allocation7], %s3827_s24 }
0x14b1   : > { %5062 = dma.done.wait (!%p4744_p6), %s3828_s17, 2688  }
0x14b2   : > { %5064 = vsyncadd (!%p4744_p6), %s3828_s17, 4294964608  ;;  %s5994_s16 = sld [smem:[#allocation14_spill]]  ;;  %s5995_s22 = sld [smem:[#allocation13_spill]] }
0x14b3   : > { %s5996_s15 = sld [smem:[#allocation15_spill]]  ;;  %s5997_s29 = smov %s5071_s30 }
0x14b8   : > { %p31_p13 = scmp.ge.s32.totalorder %s5994_s16, 4   ;;  %s5998_s30 = smov %s5995_s22 }
0x14ba   :  { %33 = sbr.rel (!%p31_p13) target bundleno = 16 (0x10), region = 162 }
0x14c1   :  { %3842 = vsyncpa [#allocation3], 1 }
0x14c2   :  { %3844 = vsyncpa [#allocation3 + $0x1], 1 }
0x14c3   :  { %3845 = vsyncpa [#allocation4], 1 }
0x14c4   :  { %3847 = vsyncpa [#allocation4 + $0x1], 1 }
0x14c5   :  { %3848 = vsyncpa [#allocation7], 1 }
0x14c6   :  { %3850 = vsyncpa [#allocation7 + $0x1], 1 }

</bundles_post_ra>
